<compile_context>
chip_gen: v6e
topology: v6e:2x2x1
jax: 0.10.0
libtpu: 0.0.40
codegen_flags: <defaults>
</compile_context>

<pallas_src>
import functools

import jax
import jax.numpy as jnp
import numpy as np
from jax import lax
from jax.experimental import pallas as pl
from jax.experimental.pallas import tpu as pltpu

EPS = 1e-6
KS = 7
PAD = KS // 2
MXU_MIN_K = 64   # contraction size at which the MXU (bf16 in, f32 acc) beats VPU FMAs


def _matvec(w, x, b=None):
    """y = w @ x (+ b).  w: (Ro, Ri), x: (Ri, P), b: (Ro, 1) or None.

    Small contractions are unrolled into VPU broadcast-FMAs (the MXU would run
    nearly empty); large ones use the MXU with bf16 inputs and f32 accumulate.
    The bias is folded into the first FMA instead of a separate zero-init.
    """
    ro, ri = w.shape
    if ri >= MXU_MIN_K:
        y = jnp.dot(w.astype(jnp.bfloat16), x.astype(jnp.bfloat16),
                    preferred_element_type=jnp.float32)
        return y if b is None else y + b
    acc = w[:, 0:1] * x[0:1, :]
    if b is not None:
        acc = acc + b
    for i in range(1, ri):
        acc = acc + w[:, i:i + 1] * x[i:i + 1, :]
    return acc


def _matvec_pair(wa, ba, wv, bv, x):
    """Fused Conv1: both output halves reuse every sublane broadcast of x."""
    ro, ri = wa.shape
    if ri >= MXU_MIN_K:
        w = jnp.concatenate([wa, wv], axis=0).astype(jnp.bfloat16)
        y = jnp.dot(w, x.astype(jnp.bfloat16), preferred_element_type=jnp.float32)
        return y[:ro] + ba, y[ro:] + bv
    xi = x[0:1, :]
    acc_a = ba + wa[:, 0:1] * xi
    acc_v = bv + wv[:, 0:1] * xi
    for i in range(1, ri):
        xi = x[i:i + 1, :]
        acc_a = acc_a + wa[:, i:i + 1] * xi
        acc_v = acc_v + wv[:, i:i + 1] * xi
    return acc_a, acc_v


def sgab_kernel(W, x_ref, masks_ref, mats_ref, rowp_ref, o_ref):
    R, HW = x_ref.shape                 # R = Bblk * C rows (sublane-dense)
    x = x_ref[...]                      # (R, HW) f32

    # Packed per-row parameters (R, 49 + 7): depthwise taps + channel vectors.
    base = KS * KS
    dwk   = rowp_ref[:, 0:base]
    ln_w  = rowp_ref[:, base + 0:base + 1]
    ln_b  = rowp_ref[:, base + 1:base + 2]
    ba    = rowp_ref[:, base + 2:base + 3]
    bv    = rowp_ref[:, base + 3:base + 4]
    dwb   = rowp_ref[:, base + 4:base + 5]
    b2    = rowp_ref[:, base + 5:base + 6]
    scale = rowp_ref[:, base + 6:base + 7]

    # Packed per-image block-diagonal matrices (R, 4R).
    gmat = mats_ref[:, 0 * R:1 * R]     # per-image channel-mean matrix (1/C)
    wa   = mats_ref[:, 1 * R:2 * R]     # Conv1, depthwise-branch half
    wv   = mats_ref[:, 2 * R:3 * R]     # Conv1, gate half
    w2   = mats_ref[:, 3 * R:4 * R]     # Conv2

    # --- LayerNorm over channels (channels_first, biased variance) ---
    u = _matvec(gmat, x)                        # per-image channel mean, per row
    xc = x - u
    s = _matvec(gmat, xc * xc)                  # biased variance
    xn = xc * lax.rsqrt(s + EPS) * ln_w + ln_b

    # --- Conv1 (1x1, C -> 2C per image), both halves fused in one pass ---
    a, gate = _matvec_pair(wa, ba, wv, bv, xn)

    # --- Depthwise 7x7 (zero pad 3) on the flat (R, H*W) slab:
    #     14 lane rolls (XLU) + precomputed edge masks; each column-shifted
    #     copy is consumed immediately into the 7 row accumulators (no stored
    #     list of 7 full copies kept live).
    mask_x = masks_ref[0:KS, :]                 # (KS, HW) column validity
    mask_y = masks_ref[KS:2 * KS, :]            # (KS, HW) row validity
    rows = [None] * KS
    for j, dx in enumerate(range(-PAD, PAD + 1)):
        sh = (-dx) % HW
        v = pltpu.roll(a, shift=sh, axis=1) if sh else a
        v = v * mask_x[j:j + 1, :]
        for i in range(KS):
            k = i * KS + j
            t = dwk[:, k:k + 1] * v
            rows[i] = t if rows[i] is None else rows[i] + t
    # dy = 0 needs neither a roll nor a row mask: init dw from it, bias folded.
    dw = rows[PAD] + dwb
    for i, dy in enumerate(range(-PAD, PAD + 1)):
        if dy == 0:
            continue
        sh = (-(dy * W)) % HW
        t = pltpu.roll(rows[i], shift=sh, axis=1)
        dw = dw + t * mask_y[i:i + 1, :]

    # --- gate * DWConv(a), Conv2 (1x1), scale + residual ---
    y2 = _matvec(w2, gate * dw, b2)
    o_ref[...] = y2 * scale + x_ref[...]


def _pick_bblk(B, C):
    """Images per grid block: smallest divisor of B that fills the 8 sublanes
    of a vreg (Bblk*C % 8 == 0).  Smallest keeps the grid as long as possible
    (>= 2 steps feeds both v7x TensorCores when B allows it) while still
    amortizing per-step overhead over a full tile."""
    for d in range(1, B + 1):
        if B % d == 0 and (d * C) % 8 == 0:
            return d
    # No divisor fills the sublanes exactly: fold the whole batch into one
    # full-extent block (exempt from the (8,128) divisibility rule).
    return B


def sgab_forward(x_nchw, p):
    B, C, H, W = x_nchw.shape
    HW = H * W
    f32 = jnp.float32

    bblk = _pick_bblk(B, C)
    R = bblk * C
    grid = (B // bblk,)
    # TODO(synk): at real SR sizes (large C / HW) cap bblk and tile HW with a
    # 3-row halo so the resident slab fits v7x's 64 MiB VMEM.

    # Lane-dense spatial slab; batch*channel rows on sublanes (pure reshape).
    x2d = x_nchw.reshape(B * C, HW).astype(f32)

    # ---- pack all per-row (per-channel) parameters into one (R, 56) slab ----
    def cvec(a):
        return np.asarray(a, np.float32).reshape(C, 1)
    dwk = np.asarray(p['dw_w'], np.float32).reshape(C, KS * KS)  # col = ky*7+kx
    b1 = np.asarray(p['conv1_b'], np.float32)
    rowp_c = np.concatenate(
        [dwk, cvec(p['ln_w']), cvec(p['ln_b']), cvec(b1[:C]), cvec(b1[C:]),
         cvec(p['dw_b']), cvec(p['conv2_b']), cvec(p['scale'])], axis=1)
    rowp = jnp.asarray(np.tile(rowp_c, (bblk, 1)))               # (R, 56)

    # ---- per-image block-diagonal matrices, packed as one (R, 4R) slab ----
    eye = np.eye(bblk, dtype=np.float32)
    w1 = np.asarray(p['conv1_w'], np.float32).reshape(2 * C, C)
    gmat = np.kron(eye, np.full((C, C), 1.0 / C, dtype=np.float32))
    wa = np.kron(eye, w1[:C])
    wv = np.kron(eye, w1[C:])
    w2 = np.kron(eye, np.asarray(p['conv2_w'], np.float32).reshape(C, C))
    mats = jnp.asarray(np.concatenate([gmat, wa, wv, w2], axis=1))  # (R, 4R)

    # ---- edge-validity masks for the 7 column / 7 row shifts, packed (14, HW)
    col = np.arange(HW) % W
    row = np.arange(HW) // W
    offs = np.arange(-PAD, PAD + 1)
    mask_x = ((col[None, :] + offs[:, None] >= 0) &
              (col[None, :] + offs[:, None] < W))
    mask_y = ((row[None, :] + offs[:, None] >= 0) &
              (row[None, :] + offs[:, None] < H))
    masks = jnp.asarray(
        np.concatenate([mask_x, mask_y], axis=0).astype(np.float32))

    def full_spec(arr):
        return pl.BlockSpec(arr.shape, lambda g: (0, 0))

    kern = functools.partial(sgab_kernel, W)
    out2d = pl.pallas_call(
        kern,
        out_shape=jax.ShapeDtypeStruct((B * C, HW), f32),
        grid_spec=pltpu.PrefetchScalarGridSpec(
            num_scalar_prefetch=0,
            grid=grid,
            in_specs=[
                pl.BlockSpec((R, HW), lambda g: (g, 0)),   # x, Bblk images/step
                full_spec(masks), full_spec(mats), full_spec(rowp),
            ],
            out_specs=pl.BlockSpec((R, HW), lambda g: (g, 0)),
        ),
        compiler_params=pltpu.CompilerParams(
            dimension_semantics=("parallel",)),
    )(x2d, masks, mats, rowp)
    return out2d.reshape(B, C, H, W)


def sgab_ref(x_nchw, p):
    """Pure-JAX reference matching the PyTorch forward (NCHW)."""
    C = x_nchw.shape[1]
    x = x_nchw.astype(jnp.float32)
    u = x.mean(1, keepdims=True)
    s = ((x - u) ** 2).mean(1, keepdims=True)
    xn = (x - u) / jnp.sqrt(s + EPS)
    xn = p['ln_w'][None, :, None, None] * xn + p['ln_b'][None, :, None, None]
    dn = ('NCHW', 'OIHW', 'NCHW')
    y1 = jax.lax.conv_general_dilated(xn, p['conv1_w'], (1, 1), 'VALID',
                                      dimension_numbers=dn)
    y1 = y1 + p['conv1_b'][None, :, None, None]
    a, v = jnp.split(y1, 2, axis=1)
    dw = jax.lax.conv_general_dilated(a, p['dw_w'], (1, 1),
                                      [(PAD, PAD), (PAD, PAD)],
                                      dimension_numbers=dn,
                                      feature_group_count=C)
    dw = dw + p['dw_b'][None, :, None, None]
    g = v * dw
    y2 = jax.lax.conv_general_dilated(g, p['conv2_w'], (1, 1), 'VALID',
                                      dimension_numbers=dn)
    y2 = y2 + p['conv2_b'][None, :, None, None]
    return y2 * p['scale'] + x


if __name__ == "__main__":
    B, C, H, W = 2, 4, 16, 16          # n_feats = 4
    key = jax.random.PRNGKey(0)
    keys = jax.random.split(key, 10)

    # Deterministic synthetic parameters (shapes from SGAB.__init__; the module
    # inits `scale` to zeros, but we use nonzero values so the kernel path is
    # actually exercised).
    params = {
        'ln_w':    jax.random.normal(keys[0], (C,)) * 0.1 + 1.0,
        'ln_b':    jax.random.normal(keys[1], (C,)) * 0.1,
        'conv1_w': jax.random.normal(keys[2], (2 * C, C, 1, 1)) * 0.2,
        'conv1_b': jax.random.normal(keys[3], (2 * C,)) * 0.1,
        'dw_w':    jax.random.normal(keys[4], (C, 1, KS, KS)) * 0.1,
        'dw_b':    jax.random.normal(keys[5], (C,)) * 0.1,
        'conv2_w': jax.random.normal(keys[6], (C, C, 1, 1)) * 0.2,
        'conv2_b': jax.random.normal(keys[7], (C,)) * 0.1,
        'scale':   jax.random.normal(keys[8], (1, C, 1, 1)) * 0.5,
    }
    x = jax.random.normal(keys[9], (B, C, H, W), dtype=jnp.float32)

    out = sgab_forward(x, params)
    out = jax.block_until_ready(out)

    ref = jax.block_until_ready(sgab_ref(x, params))
    np.testing.assert_allclose(np.asarray(out), np.asarray(ref),
                               atol=1e-4, rtol=1e-4)
    print("KERNEL_OK")
</pallas_src>

<mosaic_0001>
module attributes {stable_mosaic.version = 11 : i64} {
  func.func @sgab_kernel(%arg0: i32, %arg1: memref<8x256xf32, #tpu.memory_space<vmem>>, %arg2: memref<14x256xf32, #tpu.memory_space<vmem>>, %arg3: memref<8x32xf32, #tpu.memory_space<vmem>>, %arg4: memref<8x56xf32, #tpu.memory_space<vmem>>, %arg5: memref<8x256xf32, #tpu.memory_space<vmem>>) attributes {dimension_semantics = [#tpu.dimension_semantics<parallel>], iteration_bounds = array<i64: 1>, scalar_prefetch = 0 : i64, scratch_operands = 0 : i64, tpu.core_type = #tpu.core_type<tc>, window_params = [{transform_indices = @transform_0, window_bounds = array<i64: 8, 256>}, {pipeline_mode = #tpu.pipeline_mode<synchronous>, transform_indices = @transform_1, window_bounds = array<i64: 14, 256>}, {pipeline_mode = #tpu.pipeline_mode<synchronous>, transform_indices = @transform_2, window_bounds = array<i64: 8, 32>}, {pipeline_mode = #tpu.pipeline_mode<synchronous>, transform_indices = @transform_3, window_bounds = array<i64: 8, 56>}, {transform_indices = @transform_4, window_bounds = array<i64: 8, 256>}]} {
    %c0 = arith.constant 0 : index
    %c0_0 = arith.constant 0 : index
    %0 = vector.load %arg1[%c0, %c0_0] : memref<8x256xf32, #tpu.memory_space<vmem>>, vector<8x256xf32>
    %c0_1 = arith.constant 0 : index
    %c0_2 = arith.constant 0 : index
    %1 = vector.load %arg4[%c0_1, %c0_2] : memref<8x56xf32, #tpu.memory_space<vmem>>, vector<8x49xf32>
    %c0_3 = arith.constant 0 : index
    %c49 = arith.constant 49 : index
    %2 = vector.load %arg4[%c0_3, %c49] : memref<8x56xf32, #tpu.memory_space<vmem>>, vector<8x1xf32>
    %c0_4 = arith.constant 0 : index
    %c50 = arith.constant 50 : index
    %3 = vector.load %arg4[%c0_4, %c50] : memref<8x56xf32, #tpu.memory_space<vmem>>, vector<8x1xf32>
    %c0_5 = arith.constant 0 : index
    %c51 = arith.constant 51 : index
    %4 = vector.load %arg4[%c0_5, %c51] : memref<8x56xf32, #tpu.memory_space<vmem>>, vector<8x1xf32>
    %c0_6 = arith.constant 0 : index
    %c52 = arith.constant 52 : index
    %5 = vector.load %arg4[%c0_6, %c52] : memref<8x56xf32, #tpu.memory_space<vmem>>, vector<8x1xf32>
    %c0_7 = arith.constant 0 : index
    %c53 = arith.constant 53 : index
    %6 = vector.load %arg4[%c0_7, %c53] : memref<8x56xf32, #tpu.memory_space<vmem>>, vector<8x1xf32>
    %c0_8 = arith.constant 0 : index
    %c54 = arith.constant 54 : index
    %7 = vector.load %arg4[%c0_8, %c54] : memref<8x56xf32, #tpu.memory_space<vmem>>, vector<8x1xf32>
    %c0_9 = arith.constant 0 : index
    %c55 = arith.constant 55 : index
    %8 = vector.load %arg4[%c0_9, %c55] : memref<8x56xf32, #tpu.memory_space<vmem>>, vector<8x1xf32>
    %c0_10 = arith.constant 0 : index
    %c0_11 = arith.constant 0 : index
    %9 = vector.load %arg3[%c0_10, %c0_11] : memref<8x32xf32, #tpu.memory_space<vmem>>, vector<8x8xf32>
    %c0_12 = arith.constant 0 : index
    %c8 = arith.constant 8 : index
    %10 = vector.load %arg3[%c0_12, %c8] : memref<8x32xf32, #tpu.memory_space<vmem>>, vector<8x8xf32>
    %c0_13 = arith.constant 0 : index
    %c16 = arith.constant 16 : index
    %11 = vector.load %arg3[%c0_13, %c16] : memref<8x32xf32, #tpu.memory_space<vmem>>, vector<8x8xf32>
    %c0_14 = arith.constant 0 : index
    %c24 = arith.constant 24 : index
    %12 = vector.load %arg3[%c0_14, %c24] : memref<8x32xf32, #tpu.memory_space<vmem>>, vector<8x8xf32>
    %13 = vector.extract_strided_slice %9 {offsets = [0, 0], sizes = [8, 1], strides = [1, 1]} : vector<8x8xf32> to vector<8x1xf32>
    %14 = vector.extract_strided_slice %0 {offsets = [0, 0], sizes = [1, 256], strides = [1, 1]} : vector<8x256xf32> to vector<1x256xf32>
    %15 = vector.broadcast %13 : vector<8x1xf32> to vector<8x256xf32>
    %16 = vector.broadcast %14 : vector<1x256xf32> to vector<8x256xf32>
    %17 = arith.mulf %15, %16 : vector<8x256xf32>
    %18 = vector.extract_strided_slice %9 {offsets = [0, 1], sizes = [8, 1], strides = [1, 1]} : vector<8x8xf32> to vector<8x1xf32>
    %19 = vector.extract_strided_slice %0 {offsets = [1, 0], sizes = [1, 256], strides = [1, 1]} : vector<8x256xf32> to vector<1x256xf32>
    %20 = vector.broadcast %18 : vector<8x1xf32> to vector<8x256xf32>
    %21 = vector.broadcast %19 : vector<1x256xf32> to vector<8x256xf32>
    %22 = arith.mulf %20, %21 : vector<8x256xf32>
    %23 = arith.addf %17, %22 : vector<8x256xf32>
    %24 = vector.extract_strided_slice %9 {offsets = [0, 2], sizes = [8, 1], strides = [1, 1]} : vector<8x8xf32> to vector<8x1xf32>
    %25 = vector.extract_strided_slice %0 {offsets = [2, 0], sizes = [1, 256], strides = [1, 1]} : vector<8x256xf32> to vector<1x256xf32>
    %26 = vector.broadcast %24 : vector<8x1xf32> to vector<8x256xf32>
    %27 = vector.broadcast %25 : vector<1x256xf32> to vector<8x256xf32>
    %28 = arith.mulf %26, %27 : vector<8x256xf32>
    %29 = arith.addf %23, %28 : vector<8x256xf32>
    %30 = vector.extract_strided_slice %9 {offsets = [0, 3], sizes = [8, 1], strides = [1, 1]} : vector<8x8xf32> to vector<8x1xf32>
    %31 = vector.extract_strided_slice %0 {offsets = [3, 0], sizes = [1, 256], strides = [1, 1]} : vector<8x256xf32> to vector<1x256xf32>
    %32 = vector.broadcast %30 : vector<8x1xf32> to vector<8x256xf32>
    %33 = vector.broadcast %31 : vector<1x256xf32> to vector<8x256xf32>
    %34 = arith.mulf %32, %33 : vector<8x256xf32>
    %35 = arith.addf %29, %34 : vector<8x256xf32>
    %36 = vector.extract_strided_slice %9 {offsets = [0, 4], sizes = [8, 1], strides = [1, 1]} : vector<8x8xf32> to vector<8x1xf32>
    %37 = vector.extract_strided_slice %0 {offsets = [4, 0], sizes = [1, 256], strides = [1, 1]} : vector<8x256xf32> to vector<1x256xf32>
    %38 = vector.broadcast %36 : vector<8x1xf32> to vector<8x256xf32>
    %39 = vector.broadcast %37 : vector<1x256xf32> to vector<8x256xf32>
    %40 = arith.mulf %38, %39 : vector<8x256xf32>
    %41 = arith.addf %35, %40 : vector<8x256xf32>
    %42 = vector.extract_strided_slice %9 {offsets = [0, 5], sizes = [8, 1], strides = [1, 1]} : vector<8x8xf32> to vector<8x1xf32>
    %43 = vector.extract_strided_slice %0 {offsets = [5, 0], sizes = [1, 256], strides = [1, 1]} : vector<8x256xf32> to vector<1x256xf32>
    %44 = vector.broadcast %42 : vector<8x1xf32> to vector<8x256xf32>
    %45 = vector.broadcast %43 : vector<1x256xf32> to vector<8x256xf32>
    %46 = arith.mulf %44, %45 : vector<8x256xf32>
    %47 = arith.addf %41, %46 : vector<8x256xf32>
    %48 = vector.extract_strided_slice %9 {offsets = [0, 6], sizes = [8, 1], strides = [1, 1]} : vector<8x8xf32> to vector<8x1xf32>
    %49 = vector.extract_strided_slice %0 {offsets = [6, 0], sizes = [1, 256], strides = [1, 1]} : vector<8x256xf32> to vector<1x256xf32>
    %50 = vector.broadcast %48 : vector<8x1xf32> to vector<8x256xf32>
    %51 = vector.broadcast %49 : vector<1x256xf32> to vector<8x256xf32>
    %52 = arith.mulf %50, %51 : vector<8x256xf32>
    %53 = arith.addf %47, %52 : vector<8x256xf32>
    %54 = vector.extract_strided_slice %9 {offsets = [0, 7], sizes = [8, 1], strides = [1, 1]} : vector<8x8xf32> to vector<8x1xf32>
    %55 = vector.extract_strided_slice %0 {offsets = [7, 0], sizes = [1, 256], strides = [1, 1]} : vector<8x256xf32> to vector<1x256xf32>
    %56 = vector.broadcast %54 : vector<8x1xf32> to vector<8x256xf32>
    %57 = vector.broadcast %55 : vector<1x256xf32> to vector<8x256xf32>
    %58 = arith.mulf %56, %57 : vector<8x256xf32>
    %59 = arith.addf %53, %58 : vector<8x256xf32>
    %60 = arith.subf %0, %59 : vector<8x256xf32>
    %61 = arith.mulf %60, %60 : vector<8x256xf32>
    %62 = vector.extract_strided_slice %9 {offsets = [0, 0], sizes = [8, 1], strides = [1, 1]} : vector<8x8xf32> to vector<8x1xf32>
    %63 = vector.extract_strided_slice %61 {offsets = [0, 0], sizes = [1, 256], strides = [1, 1]} : vector<8x256xf32> to vector<1x256xf32>
    %64 = vector.broadcast %62 : vector<8x1xf32> to vector<8x256xf32>
    %65 = vector.broadcast %63 : vector<1x256xf32> to vector<8x256xf32>
    %66 = arith.mulf %64, %65 : vector<8x256xf32>
    %67 = vector.extract_strided_slice %9 {offsets = [0, 1], sizes = [8, 1], strides = [1, 1]} : vector<8x8xf32> to vector<8x1xf32>
    %68 = vector.extract_strided_slice %61 {offsets = [1, 0], sizes = [1, 256], strides = [1, 1]} : vector<8x256xf32> to vector<1x256xf32>
    %69 = vector.broadcast %67 : vector<8x1xf32> to vector<8x256xf32>
    %70 = vector.broadcast %68 : vector<1x256xf32> to vector<8x256xf32>
    %71 = arith.mulf %69, %70 : vector<8x256xf32>
    %72 = arith.addf %66, %71 : vector<8x256xf32>
    %73 = vector.extract_strided_slice %9 {offsets = [0, 2], sizes = [8, 1], strides = [1, 1]} : vector<8x8xf32> to vector<8x1xf32>
    %74 = vector.extract_strided_slice %61 {offsets = [2, 0], sizes = [1, 256], strides = [1, 1]} : vector<8x256xf32> to vector<1x256xf32>
    %75 = vector.broadcast %73 : vector<8x1xf32> to vector<8x256xf32>
    %76 = vector.broadcast %74 : vector<1x256xf32> to vector<8x256xf32>
    %77 = arith.mulf %75, %76 : vector<8x256xf32>
    %78 = arith.addf %72, %77 : vector<8x256xf32>
    %79 = vector.extract_strided_slice %9 {offsets = [0, 3], sizes = [8, 1], strides = [1, 1]} : vector<8x8xf32> to vector<8x1xf32>
    %80 = vector.extract_strided_slice %61 {offsets = [3, 0], sizes = [1, 256], strides = [1, 1]} : vector<8x256xf32> to vector<1x256xf32>
    %81 = vector.broadcast %79 : vector<8x1xf32> to vector<8x256xf32>
    %82 = vector.broadcast %80 : vector<1x256xf32> to vector<8x256xf32>
    %83 = arith.mulf %81, %82 : vector<8x256xf32>
    %84 = arith.addf %78, %83 : vector<8x256xf32>
    %85 = vector.extract_strided_slice %9 {offsets = [0, 4], sizes = [8, 1], strides = [1, 1]} : vector<8x8xf32> to vector<8x1xf32>
    %86 = vector.extract_strided_slice %61 {offsets = [4, 0], sizes = [1, 256], strides = [1, 1]} : vector<8x256xf32> to vector<1x256xf32>
    %87 = vector.broadcast %85 : vector<8x1xf32> to vector<8x256xf32>
    %88 = vector.broadcast %86 : vector<1x256xf32> to vector<8x256xf32>
    %89 = arith.mulf %87, %88 : vector<8x256xf32>
    %90 = arith.addf %84, %89 : vector<8x256xf32>
    %91 = vector.extract_strided_slice %9 {offsets = [0, 5], sizes = [8, 1], strides = [1, 1]} : vector<8x8xf32> to vector<8x1xf32>
    %92 = vector.extract_strided_slice %61 {offsets = [5, 0], sizes = [1, 256], strides = [1, 1]} : vector<8x256xf32> to vector<1x256xf32>
    %93 = vector.broadcast %91 : vector<8x1xf32> to vector<8x256xf32>
    %94 = vector.broadcast %92 : vector<1x256xf32> to vector<8x256xf32>
    %95 = arith.mulf %93, %94 : vector<8x256xf32>
    %96 = arith.addf %90, %95 : vector<8x256xf32>
    %97 = vector.extract_strided_slice %9 {offsets = [0, 6], sizes = [8, 1], strides = [1, 1]} : vector<8x8xf32> to vector<8x1xf32>
    %98 = vector.extract_strided_slice %61 {offsets = [6, 0], sizes = [1, 256], strides = [1, 1]} : vector<8x256xf32> to vector<1x256xf32>
    %99 = vector.broadcast %97 : vector<8x1xf32> to vector<8x256xf32>
    %100 = vector.broadcast %98 : vector<1x256xf32> to vector<8x256xf32>
    %101 = arith.mulf %99, %100 : vector<8x256xf32>
    %102 = arith.addf %96, %101 : vector<8x256xf32>
    %103 = vector.extract_strided_slice %9 {offsets = [0, 7], sizes = [8, 1], strides = [1, 1]} : vector<8x8xf32> to vector<8x1xf32>
    %104 = vector.extract_strided_slice %61 {offsets = [7, 0], sizes = [1, 256], strides = [1, 1]} : vector<8x256xf32> to vector<1x256xf32>
    %105 = vector.broadcast %103 : vector<8x1xf32> to vector<8x256xf32>
    %106 = vector.broadcast %104 : vector<1x256xf32> to vector<8x256xf32>
    %107 = arith.mulf %105, %106 : vector<8x256xf32>
    %108 = arith.addf %102, %107 : vector<8x256xf32>
    %cst = arith.constant 9.99999997E-7 : f32
    %109 = vector.broadcast %cst : f32 to vector<8x256xf32>
    %110 = arith.addf %108, %109 : vector<8x256xf32>
    %111 = math.rsqrt %110 : vector<8x256xf32>
    %112 = arith.mulf %60, %111 : vector<8x256xf32>
    %113 = vector.broadcast %2 : vector<8x1xf32> to vector<8x256xf32>
    %114 = arith.mulf %112, %113 : vector<8x256xf32>
    %115 = vector.broadcast %3 : vector<8x1xf32> to vector<8x256xf32>
    %116 = arith.addf %114, %115 : vector<8x256xf32>
    %117 = vector.extract_strided_slice %116 {offsets = [0, 0], sizes = [1, 256], strides = [1, 1]} : vector<8x256xf32> to vector<1x256xf32>
    %118 = vector.extract_strided_slice %10 {offsets = [0, 0], sizes = [8, 1], strides = [1, 1]} : vector<8x8xf32> to vector<8x1xf32>
    %119 = vector.broadcast %118 : vector<8x1xf32> to vector<8x256xf32>
    %120 = vector.broadcast %117 : vector<1x256xf32> to vector<8x256xf32>
    %121 = arith.mulf %119, %120 : vector<8x256xf32>
    %122 = vector.broadcast %4 : vector<8x1xf32> to vector<8x256xf32>
    %123 = arith.addf %122, %121 : vector<8x256xf32>
    %124 = vector.extract_strided_slice %11 {offsets = [0, 0], sizes = [8, 1], strides = [1, 1]} : vector<8x8xf32> to vector<8x1xf32>
    %125 = vector.broadcast %124 : vector<8x1xf32> to vector<8x256xf32>
    %126 = vector.broadcast %117 : vector<1x256xf32> to vector<8x256xf32>
    %127 = arith.mulf %125, %126 : vector<8x256xf32>
    %128 = vector.broadcast %5 : vector<8x1xf32> to vector<8x256xf32>
    %129 = arith.addf %128, %127 : vector<8x256xf32>
    %130 = vector.extract_strided_slice %116 {offsets = [1, 0], sizes = [1, 256], strides = [1, 1]} : vector<8x256xf32> to vector<1x256xf32>
    %131 = vector.extract_strided_slice %10 {offsets = [0, 1], sizes = [8, 1], strides = [1, 1]} : vector<8x8xf32> to vector<8x1xf32>
    %132 = vector.broadcast %131 : vector<8x1xf32> to vector<8x256xf32>
    %133 = vector.broadcast %130 : vector<1x256xf32> to vector<8x256xf32>
    %134 = arith.mulf %132, %133 : vector<8x256xf32>
    %135 = arith.addf %123, %134 : vector<8x256xf32>
    %136 = vector.extract_strided_slice %11 {offsets = [0, 1], sizes = [8, 1], strides = [1, 1]} : vector<8x8xf32> to vector<8x1xf32>
    %137 = vector.broadcast %136 : vector<8x1xf32> to vector<8x256xf32>
    %138 = vector.broadcast %130 : vector<1x256xf32> to vector<8x256xf32>
    %139 = arith.mulf %137, %138 : vector<8x256xf32>
    %140 = arith.addf %129, %139 : vector<8x256xf32>
    %141 = vector.extract_strided_slice %116 {offsets = [2, 0], sizes = [1, 256], strides = [1, 1]} : vector<8x256xf32> to vector<1x256xf32>
    %142 = vector.extract_strided_slice %10 {offsets = [0, 2], sizes = [8, 1], strides = [1, 1]} : vector<8x8xf32> to vector<8x1xf32>
    %143 = vector.broadcast %142 : vector<8x1xf32> to vector<8x256xf32>
    %144 = vector.broadcast %141 : vector<1x256xf32> to vector<8x256xf32>
    %145 = arith.mulf %143, %144 : vector<8x256xf32>
    %146 = arith.addf %135, %145 : vector<8x256xf32>
    %147 = vector.extract_strided_slice %11 {offsets = [0, 2], sizes = [8, 1], strides = [1, 1]} : vector<8x8xf32> to vector<8x1xf32>
    %148 = vector.broadcast %147 : vector<8x1xf32> to vector<8x256xf32>
    %149 = vector.broadcast %141 : vector<1x256xf32> to vector<8x256xf32>
    %150 = arith.mulf %148, %149 : vector<8x256xf32>
    %151 = arith.addf %140, %150 : vector<8x256xf32>
    %152 = vector.extract_strided_slice %116 {offsets = [3, 0], sizes = [1, 256], strides = [1, 1]} : vector<8x256xf32> to vector<1x256xf32>
    %153 = vector.extract_strided_slice %10 {offsets = [0, 3], sizes = [8, 1], strides = [1, 1]} : vector<8x8xf32> to vector<8x1xf32>
    %154 = vector.broadcast %153 : vector<8x1xf32> to vector<8x256xf32>
    %155 = vector.broadcast %152 : vector<1x256xf32> to vector<8x256xf32>
    %156 = arith.mulf %154, %155 : vector<8x256xf32>
    %157 = arith.addf %146, %156 : vector<8x256xf32>
    %158 = vector.extract_strided_slice %11 {offsets = [0, 3], sizes = [8, 1], strides = [1, 1]} : vector<8x8xf32> to vector<8x1xf32>
    %159 = vector.broadcast %158 : vector<8x1xf32> to vector<8x256xf32>
    %160 = vector.broadcast %152 : vector<1x256xf32> to vector<8x256xf32>
    %161 = arith.mulf %159, %160 : vector<8x256xf32>
    %162 = arith.addf %151, %161 : vector<8x256xf32>
    %163 = vector.extract_strided_slice %116 {offsets = [4, 0], sizes = [1, 256], strides = [1, 1]} : vector<8x256xf32> to vector<1x256xf32>
    %164 = vector.extract_strided_slice %10 {offsets = [0, 4], sizes = [8, 1], strides = [1, 1]} : vector<8x8xf32> to vector<8x1xf32>
    %165 = vector.broadcast %164 : vector<8x1xf32> to vector<8x256xf32>
    %166 = vector.broadcast %163 : vector<1x256xf32> to vector<8x256xf32>
    %167 = arith.mulf %165, %166 : vector<8x256xf32>
    %168 = arith.addf %157, %167 : vector<8x256xf32>
    %169 = vector.extract_strided_slice %11 {offsets = [0, 4], sizes = [8, 1], strides = [1, 1]} : vector<8x8xf32> to vector<8x1xf32>
    %170 = vector.broadcast %169 : vector<8x1xf32> to vector<8x256xf32>
    %171 = vector.broadcast %163 : vector<1x256xf32> to vector<8x256xf32>
    %172 = arith.mulf %170, %171 : vector<8x256xf32>
    %173 = arith.addf %162, %172 : vector<8x256xf32>
    %174 = vector.extract_strided_slice %116 {offsets = [5, 0], sizes = [1, 256], strides = [1, 1]} : vector<8x256xf32> to vector<1x256xf32>
    %175 = vector.extract_strided_slice %10 {offsets = [0, 5], sizes = [8, 1], strides = [1, 1]} : vector<8x8xf32> to vector<8x1xf32>
    %176 = vector.broadcast %175 : vector<8x1xf32> to vector<8x256xf32>
    %177 = vector.broadcast %174 : vector<1x256xf32> to vector<8x256xf32>
    %178 = arith.mulf %176, %177 : vector<8x256xf32>
    %179 = arith.addf %168, %178 : vector<8x256xf32>
    %180 = vector.extract_strided_slice %11 {offsets = [0, 5], sizes = [8, 1], strides = [1, 1]} : vector<8x8xf32> to vector<8x1xf32>
    %181 = vector.broadcast %180 : vector<8x1xf32> to vector<8x256xf32>
    %182 = vector.broadcast %174 : vector<1x256xf32> to vector<8x256xf32>
    %183 = arith.mulf %181, %182 : vector<8x256xf32>
    %184 = arith.addf %173, %183 : vector<8x256xf32>
    %185 = vector.extract_strided_slice %116 {offsets = [6, 0], sizes = [1, 256], strides = [1, 1]} : vector<8x256xf32> to vector<1x256xf32>
    %186 = vector.extract_strided_slice %10 {offsets = [0, 6], sizes = [8, 1], strides = [1, 1]} : vector<8x8xf32> to vector<8x1xf32>
    %187 = vector.broadcast %186 : vector<8x1xf32> to vector<8x256xf32>
    %188 = vector.broadcast %185 : vector<1x256xf32> to vector<8x256xf32>
    %189 = arith.mulf %187, %188 : vector<8x256xf32>
    %190 = arith.addf %179, %189 : vector<8x256xf32>
    %191 = vector.extract_strided_slice %11 {offsets = [0, 6], sizes = [8, 1], strides = [1, 1]} : vector<8x8xf32> to vector<8x1xf32>
    %192 = vector.broadcast %191 : vector<8x1xf32> to vector<8x256xf32>
    %193 = vector.broadcast %185 : vector<1x256xf32> to vector<8x256xf32>
    %194 = arith.mulf %192, %193 : vector<8x256xf32>
    %195 = arith.addf %184, %194 : vector<8x256xf32>
    %196 = vector.extract_strided_slice %116 {offsets = [7, 0], sizes = [1, 256], strides = [1, 1]} : vector<8x256xf32> to vector<1x256xf32>
    %197 = vector.extract_strided_slice %10 {offsets = [0, 7], sizes = [8, 1], strides = [1, 1]} : vector<8x8xf32> to vector<8x1xf32>
    %198 = vector.broadcast %197 : vector<8x1xf32> to vector<8x256xf32>
    %199 = vector.broadcast %196 : vector<1x256xf32> to vector<8x256xf32>
    %200 = arith.mulf %198, %199 : vector<8x256xf32>
    %201 = arith.addf %190, %200 : vector<8x256xf32>
    %202 = vector.extract_strided_slice %11 {offsets = [0, 7], sizes = [8, 1], strides = [1, 1]} : vector<8x8xf32> to vector<8x1xf32>
    %203 = vector.broadcast %202 : vector<8x1xf32> to vector<8x256xf32>
    %204 = vector.broadcast %196 : vector<1x256xf32> to vector<8x256xf32>
    %205 = arith.mulf %203, %204 : vector<8x256xf32>
    %206 = arith.addf %195, %205 : vector<8x256xf32>
    %c0_15 = arith.constant 0 : index
    %c0_16 = arith.constant 0 : index
    %207 = vector.load %arg2[%c0_15, %c0_16] : memref<14x256xf32, #tpu.memory_space<vmem>>, vector<7x256xf32>
    %c7 = arith.constant 7 : index
    %c0_17 = arith.constant 0 : index
    %208 = vector.load %arg2[%c7, %c0_17] : memref<14x256xf32, #tpu.memory_space<vmem>>, vector<7x256xf32>
    %c3_i32 = arith.constant 3 : i32
    %209 = tpu.dynamic_rotate %201 by %c3_i32 dim 1 : vector<8x256xf32>, i32 -> vector<8x256xf32>
    %210 = vector.extract_strided_slice %207 {offsets = [0, 0], sizes = [1, 256], strides = [1, 1]} : vector<7x256xf32> to vector<1x256xf32>
    %211 = vector.broadcast %210 : vector<1x256xf32> to vector<8x256xf32>
    %212 = arith.mulf %209, %211 : vector<8x256xf32>
    %213 = vector.extract_strided_slice %1 {offsets = [0, 0], sizes = [8, 1], strides = [1, 1]} : vector<8x49xf32> to vector<8x1xf32>
    %214 = vector.broadcast %213 : vector<8x1xf32> to vector<8x256xf32>
    %215 = arith.mulf %214, %212 : vector<8x256xf32>
    %216 = vector.extract_strided_slice %1 {offsets = [0, 7], sizes = [8, 1], strides = [1, 1]} : vector<8x49xf32> to vector<8x1xf32>
    %217 = vector.broadcast %216 : vector<8x1xf32> to vector<8x256xf32>
    %218 = arith.mulf %217, %212 : vector<8x256xf32>
    %219 = vector.extract_strided_slice %1 {offsets = [0, 14], sizes = [8, 1], strides = [1, 1]} : vector<8x49xf32> to vector<8x1xf32>
    %220 = vector.broadcast %219 : vector<8x1xf32> to vector<8x256xf32>
    %221 = arith.mulf %220, %212 : vector<8x256xf32>
    %222 = vector.extract_strided_slice %1 {offsets = [0, 21], sizes = [8, 1], strides = [1, 1]} : vector<8x49xf32> to vector<8x1xf32>
    %223 = vector.broadcast %222 : vector<8x1xf32> to vector<8x256xf32>
    %224 = arith.mulf %223, %212 : vector<8x256xf32>
    %225 = vector.extract_strided_slice %1 {offsets = [0, 28], sizes = [8, 1], strides = [1, 1]} : vector<8x49xf32> to vector<8x1xf32>
    %226 = vector.broadcast %225 : vector<8x1xf32> to vector<8x256xf32>
    %227 = arith.mulf %226, %212 : vector<8x256xf32>
    %228 = vector.extract_strided_slice %1 {offsets = [0, 35], sizes = [8, 1], strides = [1, 1]} : vector<8x49xf32> to vector<8x1xf32>
    %229 = vector.broadcast %228 : vector<8x1xf32> to vector<8x256xf32>
    %230 = arith.mulf %229, %212 : vector<8x256xf32>
    %231 = vector.extract_strided_slice %1 {offsets = [0, 42], sizes = [8, 1], strides = [1, 1]} : vector<8x49xf32> to vector<8x1xf32>
    %232 = vector.broadcast %231 : vector<8x1xf32> to vector<8x256xf32>
    %233 = arith.mulf %232, %212 : vector<8x256xf32>
    %c2_i32 = arith.constant 2 : i32
    %234 = tpu.dynamic_rotate %201 by %c2_i32 dim 1 : vector<8x256xf32>, i32 -> vector<8x256xf32>
    %235 = vector.extract_strided_slice %207 {offsets = [1, 0], sizes = [1, 256], strides = [1, 1]} : vector<7x256xf32> to vector<1x256xf32>
    %236 = vector.broadcast %235 : vector<1x256xf32> to vector<8x256xf32>
    %237 = arith.mulf %234, %236 : vector<8x256xf32>
    %238 = vector.extract_strided_slice %1 {offsets = [0, 1], sizes = [8, 1], strides = [1, 1]} : vector<8x49xf32> to vector<8x1xf32>
    %239 = vector.broadcast %238 : vector<8x1xf32> to vector<8x256xf32>
    %240 = arith.mulf %239, %237 : vector<8x256xf32>
    %241 = arith.addf %215, %240 : vector<8x256xf32>
    %242 = vector.extract_strided_slice %1 {offsets = [0, 8], sizes = [8, 1], strides = [1, 1]} : vector<8x49xf32> to vector<8x1xf32>
    %243 = vector.broadcast %242 : vector<8x1xf32> to vector<8x256xf32>
    %244 = arith.mulf %243, %237 : vector<8x256xf32>
    %245 = arith.addf %218, %244 : vector<8x256xf32>
    %246 = vector.extract_strided_slice %1 {offsets = [0, 15], sizes = [8, 1], strides = [1, 1]} : vector<8x49xf32> to vector<8x1xf32>
    %247 = vector.broadcast %246 : vector<8x1xf32> to vector<8x256xf32>
    %248 = arith.mulf %247, %237 : vector<8x256xf32>
    %249 = arith.addf %221, %248 : vector<8x256xf32>
    %250 = vector.extract_strided_slice %1 {offsets = [0, 22], sizes = [8, 1], strides = [1, 1]} : vector<8x49xf32> to vector<8x1xf32>
    %251 = vector.broadcast %250 : vector<8x1xf32> to vector<8x256xf32>
    %252 = arith.mulf %251, %237 : vector<8x256xf32>
    %253 = arith.addf %224, %252 : vector<8x256xf32>
    %254 = vector.extract_strided_slice %1 {offsets = [0, 29], sizes = [8, 1], strides = [1, 1]} : vector<8x49xf32> to vector<8x1xf32>
    %255 = vector.broadcast %254 : vector<8x1xf32> to vector<8x256xf32>
    %256 = arith.mulf %255, %237 : vector<8x256xf32>
    %257 = arith.addf %227, %256 : vector<8x256xf32>
    %258 = vector.extract_strided_slice %1 {offsets = [0, 36], sizes = [8, 1], strides = [1, 1]} : vector<8x49xf32> to vector<8x1xf32>
    %259 = vector.broadcast %258 : vector<8x1xf32> to vector<8x256xf32>
    %260 = arith.mulf %259, %237 : vector<8x256xf32>
    %261 = arith.addf %230, %260 : vector<8x256xf32>
    %262 = vector.extract_strided_slice %1 {offsets = [0, 43], sizes = [8, 1], strides = [1, 1]} : vector<8x49xf32> to vector<8x1xf32>
    %263 = vector.broadcast %262 : vector<8x1xf32> to vector<8x256xf32>
    %264 = arith.mulf %263, %237 : vector<8x256xf32>
    %265 = arith.addf %233, %264 : vector<8x256xf32>
    %c1_i32 = arith.constant 1 : i32
    %266 = tpu.dynamic_rotate %201 by %c1_i32 dim 1 : vector<8x256xf32>, i32 -> vector<8x256xf32>
    %267 = vector.extract_strided_slice %207 {offsets = [2, 0], sizes = [1, 256], strides = [1, 1]} : vector<7x256xf32> to vector<1x256xf32>
    %268 = vector.broadcast %267 : vector<1x256xf32> to vector<8x256xf32>
    %269 = arith.mulf %266, %268 : vector<8x256xf32>
    %270 = vector.extract_strided_slice %1 {offsets = [0, 2], sizes = [8, 1], strides = [1, 1]} : vector<8x49xf32> to vector<8x1xf32>
    %271 = vector.broadcast %270 : vector<8x1xf32> to vector<8x256xf32>
    %272 = arith.mulf %271, %269 : vector<8x256xf32>
    %273 = arith.addf %241, %272 : vector<8x256xf32>
    %274 = vector.extract_strided_slice %1 {offsets = [0, 9], sizes = [8, 1], strides = [1, 1]} : vector<8x49xf32> to vector<8x1xf32>
    %275 = vector.broadcast %274 : vector<8x1xf32> to vector<8x256xf32>
    %276 = arith.mulf %275, %269 : vector<8x256xf32>
    %277 = arith.addf %245, %276 : vector<8x256xf32>
    %278 = vector.extract_strided_slice %1 {offsets = [0, 16], sizes = [8, 1], strides = [1, 1]} : vector<8x49xf32> to vector<8x1xf32>
    %279 = vector.broadcast %278 : vector<8x1xf32> to vector<8x256xf32>
    %280 = arith.mulf %279, %269 : vector<8x256xf32>
    %281 = arith.addf %249, %280 : vector<8x256xf32>
    %282 = vector.extract_strided_slice %1 {offsets = [0, 23], sizes = [8, 1], strides = [1, 1]} : vector<8x49xf32> to vector<8x1xf32>
    %283 = vector.broadcast %282 : vector<8x1xf32> to vector<8x256xf32>
    %284 = arith.mulf %283, %269 : vector<8x256xf32>
    %285 = arith.addf %253, %284 : vector<8x256xf32>
    %286 = vector.extract_strided_slice %1 {offsets = [0, 30], sizes = [8, 1], strides = [1, 1]} : vector<8x49xf32> to vector<8x1xf32>
    %287 = vector.broadcast %286 : vector<8x1xf32> to vector<8x256xf32>
    %288 = arith.mulf %287, %269 : vector<8x256xf32>
    %289 = arith.addf %257, %288 : vector<8x256xf32>
    %290 = vector.extract_strided_slice %1 {offsets = [0, 37], sizes = [8, 1], strides = [1, 1]} : vector<8x49xf32> to vector<8x1xf32>
    %291 = vector.broadcast %290 : vector<8x1xf32> to vector<8x256xf32>
    %292 = arith.mulf %291, %269 : vector<8x256xf32>
    %293 = arith.addf %261, %292 : vector<8x256xf32>
    %294 = vector.extract_strided_slice %1 {offsets = [0, 44], sizes = [8, 1], strides = [1, 1]} : vector<8x49xf32> to vector<8x1xf32>
    %295 = vector.broadcast %294 : vector<8x1xf32> to vector<8x256xf32>
    %296 = arith.mulf %295, %269 : vector<8x256xf32>
    %297 = arith.addf %265, %296 : vector<8x256xf32>
    %298 = vector.extract_strided_slice %207 {offsets = [3, 0], sizes = [1, 256], strides = [1, 1]} : vector<7x256xf32> to vector<1x256xf32>
    %299 = vector.broadcast %298 : vector<1x256xf32> to vector<8x256xf32>
    %300 = arith.mulf %201, %299 : vector<8x256xf32>
    %301 = vector.extract_strided_slice %1 {offsets = [0, 3], sizes = [8, 1], strides = [1, 1]} : vector<8x49xf32> to vector<8x1xf32>
    %302 = vector.broadcast %301 : vector<8x1xf32> to vector<8x256xf32>
    %303 = arith.mulf %302, %300 : vector<8x256xf32>
    %304 = arith.addf %273, %303 : vector<8x256xf32>
    %305 = vector.extract_strided_slice %1 {offsets = [0, 10], sizes = [8, 1], strides = [1, 1]} : vector<8x49xf32> to vector<8x1xf32>
    %306 = vector.broadcast %305 : vector<8x1xf32> to vector<8x256xf32>
    %307 = arith.mulf %306, %300 : vector<8x256xf32>
    %308 = arith.addf %277, %307 : vector<8x256xf32>
    %309 = vector.extract_strided_slice %1 {offsets = [0, 17], sizes = [8, 1], strides = [1, 1]} : vector<8x49xf32> to vector<8x1xf32>
    %310 = vector.broadcast %309 : vector<8x1xf32> to vector<8x256xf32>
    %311 = arith.mulf %310, %300 : vector<8x256xf32>
    %312 = arith.addf %281, %311 : vector<8x256xf32>
    %313 = vector.extract_strided_slice %1 {offsets = [0, 24], sizes = [8, 1], strides = [1, 1]} : vector<8x49xf32> to vector<8x1xf32>
    %314 = vector.broadcast %313 : vector<8x1xf32> to vector<8x256xf32>
    %315 = arith.mulf %314, %300 : vector<8x256xf32>
    %316 = arith.addf %285, %315 : vector<8x256xf32>
    %317 = vector.extract_strided_slice %1 {offsets = [0, 31], sizes = [8, 1], strides = [1, 1]} : vector<8x49xf32> to vector<8x1xf32>
    %318 = vector.broadcast %317 : vector<8x1xf32> to vector<8x256xf32>
    %319 = arith.mulf %318, %300 : vector<8x256xf32>
    %320 = arith.addf %289, %319 : vector<8x256xf32>
    %321 = vector.extract_strided_slice %1 {offsets = [0, 38], sizes = [8, 1], strides = [1, 1]} : vector<8x49xf32> to vector<8x1xf32>
    %322 = vector.broadcast %321 : vector<8x1xf32> to vector<8x256xf32>
    %323 = arith.mulf %322, %300 : vector<8x256xf32>
    %324 = arith.addf %293, %323 : vector<8x256xf32>
    %325 = vector.extract_strided_slice %1 {offsets = [0, 45], sizes = [8, 1], strides = [1, 1]} : vector<8x49xf32> to vector<8x1xf32>
    %326 = vector.broadcast %325 : vector<8x1xf32> to vector<8x256xf32>
    %327 = arith.mulf %326, %300 : vector<8x256xf32>
    %328 = arith.addf %297, %327 : vector<8x256xf32>
    %c255_i32 = arith.constant 255 : i32
    %329 = tpu.dynamic_rotate %201 by %c255_i32 dim 1 : vector<8x256xf32>, i32 -> vector<8x256xf32>
    %330 = vector.extract_strided_slice %207 {offsets = [4, 0], sizes = [1, 256], strides = [1, 1]} : vector<7x256xf32> to vector<1x256xf32>
    %331 = vector.broadcast %330 : vector<1x256xf32> to vector<8x256xf32>
    %332 = arith.mulf %329, %331 : vector<8x256xf32>
    %333 = vector.extract_strided_slice %1 {offsets = [0, 4], sizes = [8, 1], strides = [1, 1]} : vector<8x49xf32> to vector<8x1xf32>
    %334 = vector.broadcast %333 : vector<8x1xf32> to vector<8x256xf32>
    %335 = arith.mulf %334, %332 : vector<8x256xf32>
    %336 = arith.addf %304, %335 : vector<8x256xf32>
    %337 = vector.extract_strided_slice %1 {offsets = [0, 11], sizes = [8, 1], strides = [1, 1]} : vector<8x49xf32> to vector<8x1xf32>
    %338 = vector.broadcast %337 : vector<8x1xf32> to vector<8x256xf32>
    %339 = arith.mulf %338, %332 : vector<8x256xf32>
    %340 = arith.addf %308, %339 : vector<8x256xf32>
    %341 = vector.extract_strided_slice %1 {offsets = [0, 18], sizes = [8, 1], strides = [1, 1]} : vector<8x49xf32> to vector<8x1xf32>
    %342 = vector.broadcast %341 : vector<8x1xf32> to vector<8x256xf32>
    %343 = arith.mulf %342, %332 : vector<8x256xf32>
    %344 = arith.addf %312, %343 : vector<8x256xf32>
    %345 = vector.extract_strided_slice %1 {offsets = [0, 25], sizes = [8, 1], strides = [1, 1]} : vector<8x49xf32> to vector<8x1xf32>
    %346 = vector.broadcast %345 : vector<8x1xf32> to vector<8x256xf32>
    %347 = arith.mulf %346, %332 : vector<8x256xf32>
    %348 = arith.addf %316, %347 : vector<8x256xf32>
    %349 = vector.extract_strided_slice %1 {offsets = [0, 32], sizes = [8, 1], strides = [1, 1]} : vector<8x49xf32> to vector<8x1xf32>
    %350 = vector.broadcast %349 : vector<8x1xf32> to vector<8x256xf32>
    %351 = arith.mulf %350, %332 : vector<8x256xf32>
    %352 = arith.addf %320, %351 : vector<8x256xf32>
    %353 = vector.extract_strided_slice %1 {offsets = [0, 39], sizes = [8, 1], strides = [1, 1]} : vector<8x49xf32> to vector<8x1xf32>
    %354 = vector.broadcast %353 : vector<8x1xf32> to vector<8x256xf32>
    %355 = arith.mulf %354, %332 : vector<8x256xf32>
    %356 = arith.addf %324, %355 : vector<8x256xf32>
    %357 = vector.extract_strided_slice %1 {offsets = [0, 46], sizes = [8, 1], strides = [1, 1]} : vector<8x49xf32> to vector<8x1xf32>
    %358 = vector.broadcast %357 : vector<8x1xf32> to vector<8x256xf32>
    %359 = arith.mulf %358, %332 : vector<8x256xf32>
    %360 = arith.addf %328, %359 : vector<8x256xf32>
    %c254_i32 = arith.constant 254 : i32
    %361 = tpu.dynamic_rotate %201 by %c254_i32 dim 1 : vector<8x256xf32>, i32 -> vector<8x256xf32>
    %362 = vector.extract_strided_slice %207 {offsets = [5, 0], sizes = [1, 256], strides = [1, 1]} : vector<7x256xf32> to vector<1x256xf32>
    %363 = vector.broadcast %362 : vector<1x256xf32> to vector<8x256xf32>
    %364 = arith.mulf %361, %363 : vector<8x256xf32>
    %365 = vector.extract_strided_slice %1 {offsets = [0, 5], sizes = [8, 1], strides = [1, 1]} : vector<8x49xf32> to vector<8x1xf32>
    %366 = vector.broadcast %365 : vector<8x1xf32> to vector<8x256xf32>
    %367 = arith.mulf %366, %364 : vector<8x256xf32>
    %368 = arith.addf %336, %367 : vector<8x256xf32>
    %369 = vector.extract_strided_slice %1 {offsets = [0, 12], sizes = [8, 1], strides = [1, 1]} : vector<8x49xf32> to vector<8x1xf32>
    %370 = vector.broadcast %369 : vector<8x1xf32> to vector<8x256xf32>
    %371 = arith.mulf %370, %364 : vector<8x256xf32>
    %372 = arith.addf %340, %371 : vector<8x256xf32>
    %373 = vector.extract_strided_slice %1 {offsets = [0, 19], sizes = [8, 1], strides = [1, 1]} : vector<8x49xf32> to vector<8x1xf32>
    %374 = vector.broadcast %373 : vector<8x1xf32> to vector<8x256xf32>
    %375 = arith.mulf %374, %364 : vector<8x256xf32>
    %376 = arith.addf %344, %375 : vector<8x256xf32>
    %377 = vector.extract_strided_slice %1 {offsets = [0, 26], sizes = [8, 1], strides = [1, 1]} : vector<8x49xf32> to vector<8x1xf32>
    %378 = vector.broadcast %377 : vector<8x1xf32> to vector<8x256xf32>
    %379 = arith.mulf %378, %364 : vector<8x256xf32>
    %380 = arith.addf %348, %379 : vector<8x256xf32>
    %381 = vector.extract_strided_slice %1 {offsets = [0, 33], sizes = [8, 1], strides = [1, 1]} : vector<8x49xf32> to vector<8x1xf32>
    %382 = vector.broadcast %381 : vector<8x1xf32> to vector<8x256xf32>
    %383 = arith.mulf %382, %364 : vector<8x256xf32>
    %384 = arith.addf %352, %383 : vector<8x256xf32>
    %385 = vector.extract_strided_slice %1 {offsets = [0, 40], sizes = [8, 1], strides = [1, 1]} : vector<8x49xf32> to vector<8x1xf32>
    %386 = vector.broadcast %385 : vector<8x1xf32> to vector<8x256xf32>
    %387 = arith.mulf %386, %364 : vector<8x256xf32>
    %388 = arith.addf %356, %387 : vector<8x256xf32>
    %389 = vector.extract_strided_slice %1 {offsets = [0, 47], sizes = [8, 1], strides = [1, 1]} : vector<8x49xf32> to vector<8x1xf32>
    %390 = vector.broadcast %389 : vector<8x1xf32> to vector<8x256xf32>
    %391 = arith.mulf %390, %364 : vector<8x256xf32>
    %392 = arith.addf %360, %391 : vector<8x256xf32>
    %c253_i32 = arith.constant 253 : i32
    %393 = tpu.dynamic_rotate %201 by %c253_i32 dim 1 : vector<8x256xf32>, i32 -> vector<8x256xf32>
    %394 = vector.extract_strided_slice %207 {offsets = [6, 0], sizes = [1, 256], strides = [1, 1]} : vector<7x256xf32> to vector<1x256xf32>
    %395 = vector.broadcast %394 : vector<1x256xf32> to vector<8x256xf32>
    %396 = arith.mulf %393, %395 : vector<8x256xf32>
    %397 = vector.extract_strided_slice %1 {offsets = [0, 6], sizes = [8, 1], strides = [1, 1]} : vector<8x49xf32> to vector<8x1xf32>
    %398 = vector.broadcast %397 : vector<8x1xf32> to vector<8x256xf32>
    %399 = arith.mulf %398, %396 : vector<8x256xf32>
    %400 = arith.addf %368, %399 : vector<8x256xf32>
    %401 = vector.extract_strided_slice %1 {offsets = [0, 13], sizes = [8, 1], strides = [1, 1]} : vector<8x49xf32> to vector<8x1xf32>
    %402 = vector.broadcast %401 : vector<8x1xf32> to vector<8x256xf32>
    %403 = arith.mulf %402, %396 : vector<8x256xf32>
    %404 = arith.addf %372, %403 : vector<8x256xf32>
    %405 = vector.extract_strided_slice %1 {offsets = [0, 20], sizes = [8, 1], strides = [1, 1]} : vector<8x49xf32> to vector<8x1xf32>
    %406 = vector.broadcast %405 : vector<8x1xf32> to vector<8x256xf32>
    %407 = arith.mulf %406, %396 : vector<8x256xf32>
    %408 = arith.addf %376, %407 : vector<8x256xf32>
    %409 = vector.extract_strided_slice %1 {offsets = [0, 27], sizes = [8, 1], strides = [1, 1]} : vector<8x49xf32> to vector<8x1xf32>
    %410 = vector.broadcast %409 : vector<8x1xf32> to vector<8x256xf32>
    %411 = arith.mulf %410, %396 : vector<8x256xf32>
    %412 = arith.addf %380, %411 : vector<8x256xf32>
    %413 = vector.extract_strided_slice %1 {offsets = [0, 34], sizes = [8, 1], strides = [1, 1]} : vector<8x49xf32> to vector<8x1xf32>
    %414 = vector.broadcast %413 : vector<8x1xf32> to vector<8x256xf32>
    %415 = arith.mulf %414, %396 : vector<8x256xf32>
    %416 = arith.addf %384, %415 : vector<8x256xf32>
    %417 = vector.extract_strided_slice %1 {offsets = [0, 41], sizes = [8, 1], strides = [1, 1]} : vector<8x49xf32> to vector<8x1xf32>
    %418 = vector.broadcast %417 : vector<8x1xf32> to vector<8x256xf32>
    %419 = arith.mulf %418, %396 : vector<8x256xf32>
    %420 = arith.addf %388, %419 : vector<8x256xf32>
    %421 = vector.extract_strided_slice %1 {offsets = [0, 48], sizes = [8, 1], strides = [1, 1]} : vector<8x49xf32> to vector<8x1xf32>
    %422 = vector.broadcast %421 : vector<8x1xf32> to vector<8x256xf32>
    %423 = arith.mulf %422, %396 : vector<8x256xf32>
    %424 = arith.addf %392, %423 : vector<8x256xf32>
    %425 = vector.broadcast %6 : vector<8x1xf32> to vector<8x256xf32>
    %426 = arith.addf %412, %425 : vector<8x256xf32>
    %c48_i32 = arith.constant 48 : i32
    %427 = tpu.dynamic_rotate %400 by %c48_i32 dim 1 : vector<8x256xf32>, i32 -> vector<8x256xf32>
    %428 = vector.extract_strided_slice %208 {offsets = [0, 0], sizes = [1, 256], strides = [1, 1]} : vector<7x256xf32> to vector<1x256xf32>
    %429 = vector.broadcast %428 : vector<1x256xf32> to vector<8x256xf32>
    %430 = arith.mulf %427, %429 : vector<8x256xf32>
    %431 = arith.addf %426, %430 : vector<8x256xf32>
    %c32_i32 = arith.constant 32 : i32
    %432 = tpu.dynamic_rotate %404 by %c32_i32 dim 1 : vector<8x256xf32>, i32 -> vector<8x256xf32>
    %433 = vector.extract_strided_slice %208 {offsets = [1, 0], sizes = [1, 256], strides = [1, 1]} : vector<7x256xf32> to vector<1x256xf32>
    %434 = vector.broadcast %433 : vector<1x256xf32> to vector<8x256xf32>
    %435 = arith.mulf %432, %434 : vector<8x256xf32>
    %436 = arith.addf %431, %435 : vector<8x256xf32>
    %c16_i32 = arith.constant 16 : i32
    %437 = tpu.dynamic_rotate %408 by %c16_i32 dim 1 : vector<8x256xf32>, i32 -> vector<8x256xf32>
    %438 = vector.extract_strided_slice %208 {offsets = [2, 0], sizes = [1, 256], strides = [1, 1]} : vector<7x256xf32> to vector<1x256xf32>
    %439 = vector.broadcast %438 : vector<1x256xf32> to vector<8x256xf32>
    %440 = arith.mulf %437, %439 : vector<8x256xf32>
    %441 = arith.addf %436, %440 : vector<8x256xf32>
    %c240_i32 = arith.constant 240 : i32
    %442 = tpu.dynamic_rotate %416 by %c240_i32 dim 1 : vector<8x256xf32>, i32 -> vector<8x256xf32>
    %443 = vector.extract_strided_slice %208 {offsets = [4, 0], sizes = [1, 256], strides = [1, 1]} : vector<7x256xf32> to vector<1x256xf32>
    %444 = vector.broadcast %443 : vector<1x256xf32> to vector<8x256xf32>
    %445 = arith.mulf %442, %444 : vector<8x256xf32>
    %446 = arith.addf %441, %445 : vector<8x256xf32>
    %c224_i32 = arith.constant 224 : i32
    %447 = tpu.dynamic_rotate %420 by %c224_i32 dim 1 : vector<8x256xf32>, i32 -> vector<8x256xf32>
    %448 = vector.extract_strided_slice %208 {offsets = [5, 0], sizes = [1, 256], strides = [1, 1]} : vector<7x256xf32> to vector<1x256xf32>
    %449 = vector.broadcast %448 : vector<1x256xf32> to vector<8x256xf32>
    %450 = arith.mulf %447, %449 : vector<8x256xf32>
    %451 = arith.addf %446, %450 : vector<8x256xf32>
    %c208_i32 = arith.constant 208 : i32
    %452 = tpu.dynamic_rotate %424 by %c208_i32 dim 1 : vector<8x256xf32>, i32 -> vector<8x256xf32>
    %453 = vector.extract_strided_slice %208 {offsets = [6, 0], sizes = [1, 256], strides = [1, 1]} : vector<7x256xf32> to vector<1x256xf32>
    %454 = vector.broadcast %453 : vector<1x256xf32> to vector<8x256xf32>
    %455 = arith.mulf %452, %454 : vector<8x256xf32>
    %456 = arith.addf %451, %455 : vector<8x256xf32>
    %457 = arith.mulf %206, %456 : vector<8x256xf32>
    %458 = vector.extract_strided_slice %12 {offsets = [0, 0], sizes = [8, 1], strides = [1, 1]} : vector<8x8xf32> to vector<8x1xf32>
    %459 = vector.extract_strided_slice %457 {offsets = [0, 0], sizes = [1, 256], strides = [1, 1]} : vector<8x256xf32> to vector<1x256xf32>
    %460 = vector.broadcast %458 : vector<8x1xf32> to vector<8x256xf32>
    %461 = vector.broadcast %459 : vector<1x256xf32> to vector<8x256xf32>
    %462 = arith.mulf %460, %461 : vector<8x256xf32>
    %463 = vector.broadcast %7 : vector<8x1xf32> to vector<8x256xf32>
    %464 = arith.addf %462, %463 : vector<8x256xf32>
    %465 = vector.extract_strided_slice %12 {offsets = [0, 1], sizes = [8, 1], strides = [1, 1]} : vector<8x8xf32> to vector<8x1xf32>
    %466 = vector.extract_strided_slice %457 {offsets = [1, 0], sizes = [1, 256], strides = [1, 1]} : vector<8x256xf32> to vector<1x256xf32>
    %467 = vector.broadcast %465 : vector<8x1xf32> to vector<8x256xf32>
    %468 = vector.broadcast %466 : vector<1x256xf32> to vector<8x256xf32>
    %469 = arith.mulf %467, %468 : vector<8x256xf32>
    %470 = arith.addf %464, %469 : vector<8x256xf32>
    %471 = vector.extract_strided_slice %12 {offsets = [0, 2], sizes = [8, 1], strides = [1, 1]} : vector<8x8xf32> to vector<8x1xf32>
    %472 = vector.extract_strided_slice %457 {offsets = [2, 0], sizes = [1, 256], strides = [1, 1]} : vector<8x256xf32> to vector<1x256xf32>
    %473 = vector.broadcast %471 : vector<8x1xf32> to vector<8x256xf32>
    %474 = vector.broadcast %472 : vector<1x256xf32> to vector<8x256xf32>
    %475 = arith.mulf %473, %474 : vector<8x256xf32>
    %476 = arith.addf %470, %475 : vector<8x256xf32>
    %477 = vector.extract_strided_slice %12 {offsets = [0, 3], sizes = [8, 1], strides = [1, 1]} : vector<8x8xf32> to vector<8x1xf32>
    %478 = vector.extract_strided_slice %457 {offsets = [3, 0], sizes = [1, 256], strides = [1, 1]} : vector<8x256xf32> to vector<1x256xf32>
    %479 = vector.broadcast %477 : vector<8x1xf32> to vector<8x256xf32>
    %480 = vector.broadcast %478 : vector<1x256xf32> to vector<8x256xf32>
    %481 = arith.mulf %479, %480 : vector<8x256xf32>
    %482 = arith.addf %476, %481 : vector<8x256xf32>
    %483 = vector.extract_strided_slice %12 {offsets = [0, 4], sizes = [8, 1], strides = [1, 1]} : vector<8x8xf32> to vector<8x1xf32>
    %484 = vector.extract_strided_slice %457 {offsets = [4, 0], sizes = [1, 256], strides = [1, 1]} : vector<8x256xf32> to vector<1x256xf32>
    %485 = vector.broadcast %483 : vector<8x1xf32> to vector<8x256xf32>
    %486 = vector.broadcast %484 : vector<1x256xf32> to vector<8x256xf32>
    %487 = arith.mulf %485, %486 : vector<8x256xf32>
    %488 = arith.addf %482, %487 : vector<8x256xf32>
    %489 = vector.extract_strided_slice %12 {offsets = [0, 5], sizes = [8, 1], strides = [1, 1]} : vector<8x8xf32> to vector<8x1xf32>
    %490 = vector.extract_strided_slice %457 {offsets = [5, 0], sizes = [1, 256], strides = [1, 1]} : vector<8x256xf32> to vector<1x256xf32>
    %491 = vector.broadcast %489 : vector<8x1xf32> to vector<8x256xf32>
    %492 = vector.broadcast %490 : vector<1x256xf32> to vector<8x256xf32>
    %493 = arith.mulf %491, %492 : vector<8x256xf32>
    %494 = arith.addf %488, %493 : vector<8x256xf32>
    %495 = vector.extract_strided_slice %12 {offsets = [0, 6], sizes = [8, 1], strides = [1, 1]} : vector<8x8xf32> to vector<8x1xf32>
    %496 = vector.extract_strided_slice %457 {offsets = [6, 0], sizes = [1, 256], strides = [1, 1]} : vector<8x256xf32> to vector<1x256xf32>
    %497 = vector.broadcast %495 : vector<8x1xf32> to vector<8x256xf32>
    %498 = vector.broadcast %496 : vector<1x256xf32> to vector<8x256xf32>
    %499 = arith.mulf %497, %498 : vector<8x256xf32>
    %500 = arith.addf %494, %499 : vector<8x256xf32>
    %501 = vector.extract_strided_slice %12 {offsets = [0, 7], sizes = [8, 1], strides = [1, 1]} : vector<8x8xf32> to vector<8x1xf32>
    %502 = vector.extract_strided_slice %457 {offsets = [7, 0], sizes = [1, 256], strides = [1, 1]} : vector<8x256xf32> to vector<1x256xf32>
    %503 = vector.broadcast %501 : vector<8x1xf32> to vector<8x256xf32>
    %504 = vector.broadcast %502 : vector<1x256xf32> to vector<8x256xf32>
    %505 = arith.mulf %503, %504 : vector<8x256xf32>
    %506 = arith.addf %500, %505 : vector<8x256xf32>
    %507 = vector.broadcast %8 : vector<8x1xf32> to vector<8x256xf32>
    %508 = arith.mulf %506, %507 : vector<8x256xf32>
    %c0_18 = arith.constant 0 : index
    %c0_19 = arith.constant 0 : index
    %509 = vector.load %arg1[%c0_18, %c0_19] : memref<8x256xf32, #tpu.memory_space<vmem>>, vector<8x256xf32>
    %510 = arith.addf %508, %509 : vector<8x256xf32>
    %c0_20 = arith.constant 0 : index
    %c0_21 = arith.constant 0 : index
    %511 = vector.load %arg5[%c0_20, %c0_21] : memref<8x256xf32, #tpu.memory_space<vmem>>, vector<8x256xf32>
    tpu.vector_store %arg5[%c0_20, %c0_21], %510 {strides = array<i32>} : memref<8x256xf32, #tpu.memory_space<vmem>>, vector<8x256xf32>,
    return
  }
  func.func @transform_0(%arg0: i32) -> (i32, i32) {
    %c0_i32 = arith.constant 0 : i32
    %c0_i32_0 = arith.constant 0 : i32
    return %arg0, %c0_i32 : i32, i32
  }
  func.func @transform_1(%arg0: i32) -> (i32, i32) {
    %c0_i32 = arith.constant 0 : i32
    %c0_i32_0 = arith.constant 0 : i32
    %c0_i32_1 = arith.constant 0 : i32
    return %c0_i32, %c0_i32_0 : i32, i32
  }
  func.func @transform_2(%arg0: i32) -> (i32, i32) {
    %c0_i32 = arith.constant 0 : i32
    %c0_i32_0 = arith.constant 0 : i32
    %c0_i32_1 = arith.constant 0 : i32
    return %c0_i32, %c0_i32_0 : i32, i32
  }
  func.func @transform_3(%arg0: i32) -> (i32, i32) {
    %c0_i32 = arith.constant 0 : i32
    %c0_i32_0 = arith.constant 0 : i32
    %c0_i32_1 = arith.constant 0 : i32
    return %c0_i32, %c0_i32_0 : i32, i32
  }
  func.func @transform_4(%arg0: i32) -> (i32, i32) {
    %c0_i32 = arith.constant 0 : i32
    %c0_i32_0 = arith.constant 0 : i32
    return %arg0, %c0_i32 : i32, i32
  }
}

</mosaic_0001>

<bundles_post_ra>
// kernel: tpu_custom_call.1
= control target key start
LH: loop header
LB: loop body
LE: loop exit
PB: predicated region body
PF: predicated region fallthrough
CT: control target
= control target key end

     0   :  { %9 = vsyncpa [#allocation3], 0  ;;  %s2505_s0 = inlined_call_operand.hbm [shape: f32[8,256], index: 0, kind: input, shape index: {}]   ;;  %s2506_s1 = inlined_call_operand.hbm [shape: f32[14,256], index: 1, kind: input, shape index: {}]   ;;  %s2507_s2 = inlined_call_operand.hbm [shape: f32[8,32], index: 2, kind: input, shape index: {}]   ;;  %s2508_s3 = inlined_call_operand.hbm [shape: f32[8,56], index: 3, kind: input, shape index: {}]   ;;  %s2509_s4 = inlined_call_operand.hbm [shape: f32[8,256], index: 4, kind: output, shape index: {}]  }
   0x1   :  { %10 = vsyncpa [#allocation6], 0 }
   0x2   :  { %11 = vsyncpa [#allocation9], 0 }
   0x3   :  { %12 = vsyncpa [#allocation4], 0  ;;  %s1572_s15 = smov [#allocation5]  }
   0x4   :  { %s28_s16 = sshll.u32 %s1572_s15, 4  ;;  %s29_s16 = int_to_ptr.vmem [resolvable:$true] %s28_s16 }
   0x5   :  { %s1472_s17 = scalar_lea.vmem %s29_s16, 512  ;;  %p1477_p1 = scmp.lt.s32.totalorder %s29_s16, %s29_s16 }
   0x6   :  { %p1473_p0 = scmp.ne.s32.totalorder %s29_s16, %s1472_s17  ;;  %p1478_p2 = scmp.lt.s32.totalorder %s1472_s17, %s1472_s17 }
   0x8   :  { %p1479_p3 = por %p1478_p2, %p1477_p1 }
   0xa   :  { %p1480_p4 = pnand %p1479_p3, %p1473_p0 }
   0xc   :  { %1483 = shalt.err (!%p1480_p4)
}
   0xd   :  { %s1573_s18 = smov 256   ;;  %s1574_s19 = smov 16  }
   0xe   :  { %34 = dma.hbm_to_vmem [thread:$0]  %s2506_s1, 512, %s29_s16, [#allocation6], %s1573_s18, %s1573_s18, %s1574_s19  }
   0xf   :  { %s1575_s22 = smov [#allocation2]   ;;  %s1576_s24 = smov [#allocation7]  }
  0x10   :  { %s19_s23 = sshll.u32 %s1575_s22, 4  ;;  %s41_s25 = sshll.u32 %s1576_s24, 4  ;;  %s20_s23 = int_to_ptr.vmem [resolvable:$true] %s19_s23  ;;  %s42_s25 = int_to_ptr.vmem [resolvable:$true] %s41_s25 }
  0x11   :  { %s1492_s26 = scalar_lea.vmem %s20_s23, 256  ;;  %p1497_p6 = scmp.lt.s32.totalorder %s20_s23, %s20_s23 }
  0x12   :  { %p1493_p5 = scmp.ne.s32.totalorder %s20_s23, %s1492_s26  ;;  %p1498_p7 = scmp.lt.s32.totalorder %s1492_s26, %s1492_s26 }
  0x14   :  { %p1499_p8 = por %p1498_p7, %p1497_p6 }
  0x16   :  { %p1500_p9 = pnand %p1499_p8, %p1493_p5 }
  0x18   :  { %1503 = shalt.err (!%p1500_p9)
}
  0x19   :  { %22 = dma.hbm_to_vmem [thread:$0]  %s2505_s0, 256, %s20_s23, [#allocation3]  }
  0x1a   :  { %s1512_s29 = scalar_lea.vmem %s42_s25, 128  ;;  %p1517_p11 = scmp.lt.s32.totalorder %s42_s25, %s42_s25 }
  0x1b   :  { %p1513_p10 = scmp.ne.s32.totalorder %s42_s25, %s1512_s29  ;;  %p1518_p12 = scmp.lt.s32.totalorder %s1512_s29, %s1512_s29 }
  0x1d   :  { %p1519_p13 = por %p1518_p12, %p1517_p11 }
  0x1f   :  { %p1520_p0 = pnand %p1519_p13, %p1513_p10 }
  0x21   :  { %1523 = shalt.err (!%p1520_p0)
}
  0x22   :  { %44 = dma.hbm_to_vmem [thread:$0]  %s2507_s2, 128, %s42_s25, [#allocation6]  }
  0x23   :  { %s1577_s5 = smov [#allocation8]  }
  0x24   :  { %s51_s6 = sshll.u32 %s1577_s5, 4  ;;  %s52_s6 = int_to_ptr.vmem [resolvable:$true] %s51_s6 }
  0x25   :  { %s1532_s7 = scalar_lea.vmem %s52_s6, 128  ;;  %p1537_p2 = scmp.lt.s32.totalorder %s52_s6, %s52_s6 }
  0x26   :  { %p1533_p1 = scmp.ne.s32.totalorder %s52_s6, %s1532_s7  ;;  %p1538_p3 = scmp.lt.s32.totalorder %s1532_s7, %s1532_s7 }
  0x28   :  { %p1539_p4 = por %p1538_p3, %p1537_p2 }
  0x2a   :  { %p1540_p5 = pnand %p1539_p4, %p1533_p1 }
  0x2c   :  { %1543 = shalt.err (!%p1540_p5)
}
  0x2d   :  { %54 = dma.hbm_to_vmem [thread:$0]  %s2508_s3, 128, %s52_s6, [#allocation9]  }
  0x2e   :  { %1564 = dma.done.wait [#allocation3], 256  }
  0x2f   :  { %1565 = vsyncadd [#allocation3], 4294967040 }
  0x30   :  { %1566 = dma.done.wait [#allocation6], 640  }
  0x31   :  { %1567 = vsyncadd [#allocation6], 4294966656 }
  0x32   :  { %1568 = dma.done.wait [#allocation9], 128  }
  0x33   :  { %1569 = vsyncadd [#allocation9], 4294967168  ;;  %v1578_v0 = vmov 2   ;;  %v1579_v1 = vmov 0   ;;  %v1686_v2 = vld [vmem:[#allocation7] sm:$0xff]  ;;  %v1580_v3 = vmov 3   ;;  %v76_v36 = vlaneseq }
  0x34   :  { %1370 = vset.pattern.permute.xlu1 %v1578_v0  ;;  %1368 = vset.pattern.permute.xlu0 %v1579_v1  ;;  %v1581_v4 = vmov 1   ;;  %v1582_v5 = vmov 4   ;;  %v1583_v6 = vmov 5   ;;  %v1698_v7 = vld [vmem:[#allocation8] sm:$0xff]  ;;  %v1584_v8 = vmov 6   ;;  %v1767_v42 = vld [vmem:[#allocation2] sm:$0xff] }
  0x35   :  { %103 = vperm.xlu1 %1370, %v1686_v2   ;;  %73 = vperm.xlu0 %1368, %v1686_v2   ;;  %v1585_v9 = vmov 49   ;;  %v1586_v10 = vmov 7   ;;  %v1587_v11 = vmov 51   ;;  %v1588_v12 = vmov 50   ;;  %v1769_v43 = vld [vmem:[#allocation2 + $0x8] sm:$0xff]  ;;  %s1623_s2 = smov 3  }
  0x36   :  { %v1589_v13 = vmov 9   ;;  %v1590_v14 = vmov 8   ;;  %v1591_v15 = vmov 18   ;;  %v1592_v16 = vmov 16   ;;  %s1624_s3 = smov 2   ;;  %s1626_s9 = smov 127  }
  0x37   :  { %v1593_v17 = vmov 12   ;;  %v1594_v18 = vmov 52   ;;  %v1595_v19 = vmov 21   ;;  %v1596_v20 = vmov 17   ;;  %s1628_s10 = smov 126   ;;  %s1629_s11 = smov 125  }
  0x38   :  { %v1597_v21 = vmov 15   ;;  %v1598_v22 = vmov 10   ;;  %v1599_v23 = vmov 11   ;;  %v2512_v24 = vmov 28   ;;  %s1630_s12 = smov 1   ;;  %s1639_s13 = smov 48  }
  0x39   :  { %1371 = vset.pattern.permute.xlu1 %v1580_v3  ;;  %1369 = vset.pattern.permute.xlu0 %v1581_v4  ;;  %v1601_v25 = vmov 19   ;;  %v1602_v26 = vmov 20   ;;  %v1603_v27 = vmov 22   ;;  %v1604_v28 = vmov 13   ;;  %s1640_s14 = smov 32   ;;  %s1641_s15 = smov 112  }
  0x3a   :  { %119 = vperm.xlu1 %1371, %v1686_v2   ;;  %87 = vperm.xlu0 %1369, %v1686_v2   ;;  %v1605_v29 = vmov 43   ;;  %v1606_v30 = vmov 14   ;;  %v1607_v31 = vmov 23   ;;  %v1608_v32 = vmov 44   ;;  %s1642_s16 = smov 96   ;;  %s1643_s17 = smov 80  }
  0x3b   :  { %v1609_v33 = vmov 38   ;;  %v1610_v34 = vmov 35   ;;  %v1611_v35 = vmov 42   ;;  %v1612_v37 = vmov 33   ;;  %s1645_s18 = smov [#allocation10]  }
  0x3c   :  { %v77_v38 = vshrl.u32 %v76_v36, 7  ;;  %v1613_v40 = vmov 40   ;;  %v2513_v49 = vmov 29  }
  0x3e   :  { %1372 = vset.pattern.permute.xlu1 %v1582_v5  ;;  %1373 = vset.pattern.permute.xlu0 %v1583_v6  ;;  %v1762_v39 = vsub.s32 0, %v77_v38  ;;  %v1765_v41 = vsub.s32 1, %v77_v38  ;;  %v1771_v44 = vsub.s32 2, %v77_v38  ;;  %v1783_v50 = vsub.s32 3, %v77_v38 }
  0x3f   :  { %135 = vperm.xlu1 %1372, %v1686_v2   ;;  %151 = vperm.xlu0 %1373, %v1686_v2   ;;  %v1789_v53 = vsub.s32 4, %v77_v38  ;;  %v1801_v60 = vsub.s32 5, %v77_v38 }
  0x40   :  { %2540 = vst [vmem:[#allocation15_spill] sm:$0xff] %v1762_v39  ;;  %2541 = vst [vmem:[#allocation16_spill] sm:$0xff] %v1765_v41  ;;  %v79_v47 = vrot.slane %v1767_v42, %v1762_v39  ;;  %v83_v48 = vrot.slane %v1769_v43, %v1762_v39  ;;  %v93_v51 = vrot.slane %v1767_v42, %v1765_v41 }
  0x41   :  { %2542 = vst [vmem:[#allocation17_spill] sm:$0xff] %v1771_v44  ;;  %2543 = vst [vmem:[#allocation18_spill] sm:$0xff] %v1783_v50  ;;  %v97_v52 = vrot.slane %v1769_v43, %v1765_v41  ;;  %v109_v54 = vrot.slane %v1767_v42, %v1771_v44  ;;  %v113_v55 = vrot.slane %v1769_v43, %v1771_v44 }
  0x42   :  { %v125_v61 = vrot.slane %v1767_v42, %v1783_v50  ;;  %v129_v62 = vrot.slane %v1769_v43, %v1783_v50 }
  0x43   :  { %1374 = vset.pattern.permute.xlu1 %v1584_v8  ;;  %1376 = vset.pattern.permute.xlu0 %v1585_v9 }
  0x44   :  { %167 = vperm.xlu1 %1374, %v1686_v2   ;;  %304 = vperm.xlu0 %1376, %v1698_v7  }
  0x48   :  { %1375 = vset.pattern.permute.xlu1 %v1586_v10  ;;  %1379 = vset.pattern.permute.xlu0 %v1587_v11  ;;  %v157_v11 = vrot.slane %v1767_v42, %v1801_v60 }
  0x49   :  { %183 = vperm.xlu1 %1375, %v1686_v2   ;;  %330 = vperm.xlu0 %1379, %v1698_v7  }
  0x4d   :  { %1377 = vset.pattern.permute.xlu1 %v1588_v12  ;;  %1382 = vset.pattern.permute.xlu0 %v1589_v13  ;;  %v161_v12 = vrot.slane %v1769_v43, %v1801_v60 }
  0x4e   :  { %310 = vperm.xlu1 %1377, %v1698_v7   ;;  %348 = vperm.xlu0 %1382, %v1686_v2  }
  0x52   :  { %1378 = vset.pattern.permute.xlu1 %v1590_v14  ;;  %1385 = vset.pattern.permute.xlu0 %v1591_v15 }
  0x53   :  { %316 = vperm.xlu1 %1378, %v1686_v2   ;;  %388 = vperm.xlu0 %1385, %v1686_v2  }
  0x57   :  { %1380 = vset.pattern.permute.xlu1 %v1592_v16  ;;  %1388 = vset.pattern.permute.xlu0 %v1593_v17 }
  0x58   :  { %336 = vperm.xlu1 %1380, %v1686_v2   ;;  %420 = vperm.xlu0 %1388, %v1686_v2  }
  0x5c   :  { %1381 = vset.pattern.permute.xlu1 %v1594_v18  ;;  %1391 = vset.pattern.permute.xlu0 %v1595_v19 }
  0x5d   :  { %342 = vperm.xlu1 %1381, %v1698_v7   ;;  %460 = vperm.xlu0 %1391, %v1686_v2  }
  0x61   :  { %1383 = vset.pattern.permute.xlu1 %v1596_v20  ;;  %1394 = vset.pattern.permute.xlu0 %v1597_v21 }
  0x62   :  { %364 = vperm.xlu1 %1383, %v1686_v2   ;;  %492 = vperm.xlu0 %1394, %v1686_v2  }
  0x66   :  { %1384 = vset.pattern.permute.xlu1 %v1598_v22  ;;  %1397 = vset.pattern.permute.xlu0 %v1586_v10 }
  0x67   :  { %372 = vperm.xlu1 %1384, %v1686_v2   ;;  %547 = vperm.xlu0 %1397, %v1698_v7  }
  0x6b   :  { %1386 = vset.pattern.permute.xlu1 %v1599_v23  ;;  %1400 = vset.pattern.permute.xlu0 %v2512_v24 }
  0x6c   :  { %396 = vperm.xlu1 %1386, %v1686_v2   ;;  %565 = vperm.xlu0 %1400, %v1698_v7  }
  0x70   :  { %1387 = vset.pattern.permute.xlu1 %v1601_v25  ;;  %1403 = vset.pattern.permute.xlu0 %v1581_v4  ;;  %v145_v4 = vrot.slane %v1769_v43, %v1789_v53 }
  0x71   :  { %412 = vperm.xlu1 %1387, %v1686_v2   ;;  %600 = vperm.xlu0 %1403, %v1698_v7  }
  0x75   :  { %1389 = vset.pattern.permute.xlu1 %v1602_v26  ;;  %1406 = vset.pattern.permute.xlu0 %v1603_v27 }
  0x76   :  { %436 = vperm.xlu1 %1389, %v1686_v2   ;;  %624 = vperm.xlu0 %1406, %v1698_v7  }
  0x7a   :  { %1390 = vset.pattern.permute.xlu1 %v1604_v28  ;;  %1409 = vset.pattern.permute.xlu0 %v1605_v29 }
  0x7b   :  { %444 = vperm.xlu1 %1390, %v1686_v2   ;;  %648 = vperm.xlu0 %1409, %v1698_v7  }
  0x7f   :  { %1392 = vset.pattern.permute.xlu1 %v1606_v30  ;;  %1410 = vset.pattern.permute.xlu0 %v1578_v0 }
  0x80   :  { %468 = vperm.xlu1 %1392, %v1686_v2   ;;  %673 = vperm.xlu0 %1410, %v1698_v7  }
  0x84   :  { %1393 = vset.pattern.permute.xlu1 %v1603_v27  ;;  %1413 = vset.pattern.permute.xlu0 %v1607_v31 }
  0x85   :  { %484 = vperm.xlu1 %1393, %v1686_v2   ;;  %697 = vperm.xlu0 %1413, %v1698_v7  }
  0x89   :  { %1395 = vset.pattern.permute.xlu1 %v1607_v31  ;;  %1416 = vset.pattern.permute.xlu0 %v1608_v32 }
  0x8a   :  { %508 = vperm.xlu1 %1395, %v1686_v2   ;;  %721 = vperm.xlu0 %1416, %v1698_v7   ;;  %v141_v2 = vrot.slane %v1767_v42, %v1789_v53 }
  0x8e   :  { %1396 = vset.pattern.permute.xlu1 %v1579_v1  ;;  %1419 = vset.pattern.permute.xlu0 %v1596_v20  ;;  %v1615_v1 = vmov 36  }
  0x8f   :  { %541 = vperm.xlu1 %1396, %v1698_v7   ;;  %755 = vperm.xlu0 %1419, %v1698_v7  }
  0x93   :  { %1398 = vset.pattern.permute.xlu1 %v1606_v30  ;;  %1422 = vset.pattern.permute.xlu0 %v1609_v33  ;;  %v1832_v33 = vsub.s32 7, %v77_v38 }
  0x94   :  { %553 = vperm.xlu1 %1398, %v1698_v7   ;;  %779 = vperm.xlu0 %1422, %v1698_v7  }
  0x95   :  { %2545 = vst [vmem:[#allocation20_spill] sm:$0xff] %v1832_v33 }
  0x98   :  { %1399 = vset.pattern.permute.xlu1 %v1595_v19  ;;  %1425 = vset.pattern.permute.xlu0 %v1583_v6 }
  0x99   :  { %559 = vperm.xlu1 %1399, %v1698_v7   ;;  %885 = vperm.xlu0 %1425, %v1698_v7  }
  0x9d   :  { %1401 = vset.pattern.permute.xlu1 %v1610_v34  ;;  %1428 = vset.pattern.permute.xlu0 %v1584_v8 }
  0x9e   :  { %571 = vperm.xlu1 %1401, %v1698_v7   ;;  %958 = vperm.xlu0 %1428, %v1698_v7  }
  0xa2   :  { %1402 = vset.pattern.permute.xlu1 %v1611_v35  ;;  %1431 = vset.pattern.permute.xlu0 %v1604_v28 }
  0xa3   :  { %577 = vperm.xlu1 %1402, %v1698_v7   ;;  %966 = vperm.xlu0 %1431, %v1698_v7  }
  0xa7   :  { %1404 = vset.pattern.permute.xlu1 %v1590_v14  ;;  %1434 = vset.pattern.permute.xlu0 %v1612_v37  ;;  %v1820_v14 = vsub.s32 6, %v77_v38  ;;  %v193_v38 = vrot.slane %v1769_v43, %v1832_v33 }
  0xa8   :  { %608 = vperm.xlu1 %1404, %v1698_v7   ;;  %917 = vperm.xlu0 %1434, %v1698_v7  }
  0xa9   :  { %2544 = vst [vmem:[#allocation19_spill] sm:$0xff] %v1820_v14  ;;  %v173_v37 = vrot.slane %v1767_v42, %v1820_v14 }
  0xac   :  { %1405 = vset.pattern.permute.xlu1 %v1597_v21  ;;  %1437 = vset.pattern.permute.xlu0 %v1613_v40  ;;  %v177_v40 = vrot.slane %v1769_v43, %v1820_v14 }
  0xad   :  { %616 = vperm.xlu1 %1405, %v1698_v7  }
  0xb0   :  { %v1773_v45 = vpop.permute.xlu1 %103  ;;  %v1775_v46 = vpop.permute.xlu0 %73 }
  0xb1   :  { %1407 = vset.pattern.permute.xlu1 %v2513_v49  ;;  %v84_v56 = vmul.f32 %v79_v47, %v1775_v46  ;;  %v85_v57 = vmul.f32 %v83_v48, %v1775_v46  ;;  %v114_v6 = vmul.f32 %v109_v54, %v1773_v45  ;;  %v115_v8 = vmul.f32 %v113_v55, %v1773_v45 }
  0xb2   :  { %632 = vperm.xlu1 %1407, %v1698_v7  }
  0xb5   :  { %v1797_v58 = vpop.permute.xlu1 %119  ;;  %v1799_v59 = vpop.permute.xlu0 %87 }
  0xb6   :  { %v98_v63 = vmul.f32 %v93_v51, %v1799_v59  ;;  %v99_v0 = vmul.f32 %v97_v52, %v1799_v59  ;;  %1408 = vset.pattern.permute.xlu1 %v1615_v1  ;;  %v130_v18 = vmul.f32 %v125_v61, %v1797_v58  ;;  %v131_v19 = vmul.f32 %v129_v62, %v1797_v58 }
  0xb7   :  { %640 = vperm.xlu1 %1408, %v1698_v7  }
  0xb8   :  { %v100_v9 = vadd.f32 %v98_v63, %v84_v56  ;;  %v101_v10 = vadd.f32 %v99_v0, %v85_v57  ;;  %v2511_v0 = vmov 30  }
  0xba   :  { %v116_v20 = vadd.f32 %v114_v6, %v100_v9  ;;  %v117_v21 = vadd.f32 %v115_v8, %v101_v10  ;;  %v1824_v27 = vpop.permute.xlu1 %135  ;;  %v1826_v28 = vpop.permute.xlu0 %151  ;;  %v1617_v9 = vmov 37  }
  0xbb   :  { %v146_v29 = vmul.f32 %v141_v2, %v1824_v27  ;;  %v147_v30 = vmul.f32 %v145_v4, %v1824_v27  ;;  %1411 = vset.pattern.permute.xlu1 %v1589_v13  ;;  %v162_v34 = vmul.f32 %v157_v11, %v1826_v28  ;;  %v163_v35 = vmul.f32 %v161_v12, %v1826_v28 }
  0xbc   :  { %681 = vperm.xlu1 %1411, %v1698_v7   ;;  %v132_v31 = vadd.f32 %v130_v18, %v116_v20  ;;  %v133_v32 = vadd.f32 %v131_v19, %v117_v21  ;;  %v189_v13 = vrot.slane %v1767_v42, %v1832_v33 }
  0xbe   :  { %v148_v47 = vadd.f32 %v146_v29, %v132_v31  ;;  %v149_v48 = vadd.f32 %v147_v30, %v133_v32 }
  0xbf   :  { %v1840_v51 = vpop.permute.xlu1 %167 }
  0xc0   :  { %1412 = vset.pattern.permute.xlu1 %v1592_v16  ;;  %v164_v52 = vadd.f32 %v162_v34, %v148_v47  ;;  %v165_v54 = vadd.f32 %v163_v35, %v149_v48  ;;  %v178_v55 = vmul.f32 %v173_v37, %v1840_v51  ;;  %v179_v56 = vmul.f32 %v177_v40, %v1840_v51 }
  0xc1   :  { %689 = vperm.xlu1 %1412, %v1698_v7  }
  0xc2   :  { %v180_v61 = vadd.f32 %v178_v55, %v164_v52  ;;  %v181_v62 = vadd.f32 %v179_v56, %v165_v54 }
  0xc4   :  { %v1850_v57 = vpop.permute.xlu1 %183 }
  0xc5   :  { %v194_v16 = vmul.f32 %v189_v13, %v1850_v57  ;;  %v195_v63 = vmul.f32 %v193_v38, %v1850_v57  ;;  %1414 = vset.pattern.permute.xlu1 %v2511_v0  ;;  %v2107_v0 = vand.u32 127, %v76_v36 }
  0xc6   :  { %705 = vperm.xlu1 %1414, %v1698_v7  }
  0xc7   :  { %v196_v1 = vadd.f32 %v194_v16, %v180_v61  ;;  %v197_v2 = vadd.f32 %v195_v63, %v181_v62  ;;  %vm527_vm0 = vcmp.lt.s32.totalorder %v2107_v0, 3  ;;  %vm586_vm1 = vcmp.lt.s32.totalorder %v2107_v0, 2 }
  0xc8   :  { %vm659_vm2 = vcmp.lt.s32.totalorder %v2107_v0, 1  ;;  %vm798_vm3 = vcmp.lt.s32.totalorder %v2107_v0, 127  ;;  %vm871_vm4 = vcmp.lt.s32.totalorder %v2107_v0, 126  ;;  %vm944_vm5 = vcmp.lt.s32.totalorder %v2107_v0, 125 }
  0xc9   :  { %v1857_v4 = vsub.f32 %v1767_v42, %v196_v1  ;;  %v1860_v6 = vsub.f32 %v1769_v43, %v197_v2  ;;  %v1862_v8 = vpop.permute.xlu1 %310  ;;  %vm1023_vm6 = vcmp.lt.s32.totalorder %v2107_v0, 48  ;;  %vm1042_vm7 = vcmp.lt.s32.totalorder %v2107_v0, 32 }
  0xca   :  { %1415 = vset.pattern.permute.xlu1 %v1617_v9  ;;  %vm1061_vm8 = vcmp.lt.s32.totalorder %v2107_v0, 16  ;;  %vm1080_vm9 = vcmp.lt.s32.totalorder %v2107_v0, 112  ;;  %vm1099_vm10 = vcmp.lt.s32.totalorder %v2107_v0, 96  ;;  %vm1118_vm11 = vcmp.lt.s32.totalorder %v2107_v0, 80 }
  0xcb   :  { %v200_v10 = vmul.f32 %v1857_v4, %v1857_v4  ;;  %v201_v11 = vmul.f32 %v1860_v6, %v1860_v6  ;;  %713 = vperm.xlu1 %1415, %v1698_v7  }
  0xcd   :  { %v205_v12 = vrot.slane %v200_v10, %v1762_v39  ;;  %v209_v42 = vrot.slane %v201_v11, %v1762_v39  ;;  %v215_v18 = vrot.slane %v200_v10, %v1765_v41  ;;  %v219_v43 = vrot.slane %v201_v11, %v1765_v41 }
  0xce   :  { %v227_v19 = vrot.slane %v200_v10, %v1771_v44  ;;  %v231_v20 = vrot.slane %v201_v11, %v1771_v44  ;;  %v239_v21 = vrot.slane %v200_v10, %v1783_v50  ;;  %v243_v29 = vrot.slane %v201_v11, %v1783_v50  ;;  %v1877_v30 = vpop.permute.xlu1 %316 }
  0xcf   :  { %v210_v31 = vmul.f32 %v205_v12, %v1775_v46  ;;  %v211_v32 = vmul.f32 %v209_v42, %v1775_v46  ;;  %v220_v34 = vmul.f32 %v215_v18, %v1799_v59  ;;  %v221_v35 = vmul.f32 %v219_v43, %v1799_v59  ;;  %1417 = vset.pattern.permute.xlu1 %v1580_v3 }
  0xd0   :  { %v232_v37 = vmul.f32 %v227_v19, %v1773_v45  ;;  %v233_v40 = vmul.f32 %v231_v20, %v1773_v45  ;;  %739 = vperm.xlu1 %1417, %v1698_v7   ;;  %v251_v13 = vrot.slane %v200_v10, %v1789_v53  ;;  %v255_v38 = vrot.slane %v201_v11, %v1789_v53 }
  0xd1   :  { %v222_v47 = vadd.f32 %v220_v34, %v210_v31  ;;  %v223_v48 = vadd.f32 %v221_v35, %v211_v32  ;;  %v263_v46 = vrot.slane %v200_v10, %v1801_v60  ;;  %v267_v52 = vrot.slane %v201_v11, %v1801_v60 }
  0xd2   :  { %v244_v3 = vmul.f32 %v239_v21, %v1797_v58  ;;  %v245_v55 = vmul.f32 %v243_v29, %v1797_v58  ;;  %v275_v45 = vrot.slane %v200_v10, %v1820_v14  ;;  %v279_v61 = vrot.slane %v201_v11, %v1820_v14 }
  0xd3   :  { %v234_v54 = vadd.f32 %v232_v37, %v222_v47  ;;  %v235_v59 = vadd.f32 %v233_v40, %v223_v48  ;;  %v1893_v56 = vpop.permute.xlu1 %336  ;;  %v256_v63 = vmul.f32 %v251_v13, %v1824_v27  ;;  %v257_v1 = vmul.f32 %v255_v38, %v1824_v27 }
  0xd4   :  { %1418 = vset.pattern.permute.xlu1 %v1598_v22  ;;  %v268_v2 = vmul.f32 %v263_v46, %v1826_v28  ;;  %v269_v58 = vmul.f32 %v267_v52, %v1826_v28  ;;  %v287_v42 = vrot.slane %v200_v10, %v1832_v33  ;;  %v291_v18 = vrot.slane %v201_v11, %v1832_v33 }
  0xd5   :  { %v246_v62 = vadd.f32 %v244_v3, %v234_v54  ;;  %v247_v16 = vadd.f32 %v245_v55, %v235_v59  ;;  %747 = vperm.xlu1 %1418, %v1698_v7   ;;  %v280_v20 = vmul.f32 %v275_v45, %v1840_v51  ;;  %v281_v27 = vmul.f32 %v279_v61, %v1840_v51  ;;  %v305_v51 = vpop.permute.xlu0 %304 }
  0xd6   :  { %v1618_v21 = vmov 24   ;;  %v292_v31 = vmul.f32 %v287_v42, %v1850_v57  ;;  %v293_v10 = vmul.f32 %v291_v18, %v1850_v57  ;;  %v2510_v35 = vmov 31  }
  0xd7   :  { %v258_v9 = vadd.f32 %v256_v63, %v246_v62  ;;  %v259_v12 = vadd.f32 %v257_v1, %v247_v16 }
  0xd8   :  { %v1905_v43 = vpop.permute.xlu1 %342 }
  0xd9   :  { %v270_v22 = vadd.f32 %v268_v2, %v258_v9  ;;  %v271_v19 = vadd.f32 %v269_v58, %v259_v12  ;;  %1420 = vset.pattern.permute.xlu1 %v1618_v21  ;;  %v331_v48 = vpop.permute.xlu0 %330  ;;  %v1620_v9 = vmov 32  }
  0xda   :  { %763 = vperm.xlu1 %1420, %v1698_v7  }
  0xdb   :  { %v282_v28 = vadd.f32 %v280_v20, %v270_v22  ;;  %v283_v29 = vadd.f32 %v281_v27, %v271_v19 }
  0xdd   :  { %v294_v11 = vadd.f32 %v292_v31, %v282_v28  ;;  %v295_v32 = vadd.f32 %v293_v10, %v283_v29  ;;  %v365_v34 = vpop.permute.xlu1 %364  ;;  %v349_v13 = vpop.permute.xlu0 %348 }
  0xde   :  { %1421 = vset.pattern.permute.xlu1 %v2510_v35 }
  0xdf   :  { %v296_v37 = vadd.f32 1e-06, %v294_v11  ;;  %v297_v40 = vadd.f32 1e-06, %v295_v32  ;;  %771 = vperm.xlu1 %1421, %v1698_v7  }
  0xe1   :  { %1456 = vrsqrt.f32 %v296_v37  ;;  %v389_v3 = vpop.permute.xlu0 %388 }
  0xe2   :  { %1458 = vrsqrt.f32 %v297_v40  ;;  %v373_v47 = vpop.permute.xlu1 %372 }
  0xe3   :  { %1423 = vset.pattern.permute.xlu1 %v1582_v5 }
  0xe4   :  { %812 = vperm.xlu1 %1423, %v1698_v7  }
  0xe5   :  { %v421_v58 = vpop.permute.xlu0 %420 }
  0xe7   :  { %v1917_v57 = vpop.permute.xlu1 %396 }
  0xe8   :  { %1424 = vset.pattern.permute.xlu1 %v1599_v23 }
  0xe9   :  { %820 = vperm.xlu1 %1424, %v1698_v7  }
  0xec   :  { %v1921_v38 = vpop.permute.xlu1 %412 }
  0xed   :  { %1426 = vset.pattern.permute.xlu1 %v1591_v15 }
  0xee   :  { %v1457_v46 = vpop.eup %1456  ;;  %828 = vperm.xlu1 %1426, %v1698_v7  }
  0xef   :  { %v1459_v52 = vpop.eup %1458  ;;  %v300_v5 = vmul.f32 %v1457_v46, %v1857_v4 }
  0xf0   :  { %v301_v54 = vmul.f32 %v1459_v52, %v1860_v6 }
  0xf1   :  { %v307_v59 = vmul.f32 %v305_v51, %v300_v5  ;;  %v1927_v55 = vpop.permute.xlu1 %436 }
  0xf2   :  { %v308_v23 = vmul.f32 %v305_v51, %v301_v54  ;;  %1427 = vset.pattern.permute.xlu1 %v1593_v17 }
  0xf3   :  { %v1931_v45 = vadd.f32 %v1862_v8, %v307_v59  ;;  %893 = vperm.xlu1 %1427, %v1698_v7  }
  0xf4   :  { %v1935_v15 = vadd.f32 %v1862_v8, %v308_v23 }
  0xf5   :  { %v322_v4 = vrot.slane %v1931_v45, %v1762_v39  ;;  %v354_v6 = vrot.slane %v1931_v45, %v1765_v41  ;;  %v378_v61 = vrot.slane %v1931_v45, %v1771_v44  ;;  %v426_v22 = vrot.slane %v1931_v45, %v1789_v53 }
  0xf6   :  { %v326_v17 = vrot.slane %v1935_v15, %v1762_v39  ;;  %v358_v62 = vrot.slane %v1935_v15, %v1765_v41  ;;  %v382_v16 = vrot.slane %v1935_v15, %v1771_v44  ;;  %v1949_v8 = vpop.permute.xlu1 %444  ;;  %v450_v52 = vrot.slane %v1931_v45, %v1801_v60 }
  0xf7   :  { %v327_v63 = vmul.f32 %v322_v4, %v1877_v30  ;;  %v339_v1 = vmul.f32 %v1893_v56, %v322_v4  ;;  %v391_v2 = vmul.f32 %v389_v3, %v378_v61  ;;  %1429 = vset.pattern.permute.xlu1 %v1620_v9  ;;  %v359_v20 = vmul.f32 %v354_v6, %v349_v13 }
  0xf8   :  { %v328_v12 = vmul.f32 %v326_v17, %v1877_v30  ;;  %v340_v42 = vmul.f32 %v1893_v56, %v326_v17  ;;  %v392_v18 = vmul.f32 %v389_v3, %v382_v16  ;;  %844 = vperm.xlu1 %1429, %v1698_v7   ;;  %v367_v28 = vmul.f32 %v365_v34, %v354_v6 }
  0xf9   :  { %v333_v19 = vadd.f32 %v331_v48, %v327_v63  ;;  %v345_v27 = vadd.f32 %v1905_v43, %v339_v1  ;;  %v360_v31 = vmul.f32 %v358_v62, %v349_v13  ;;  %v368_v11 = vmul.f32 %v365_v34, %v358_v62  ;;  %v461_v34 = vpop.permute.xlu0 %460 }
  0xfa   :  { %v334_v29 = vadd.f32 %v331_v48, %v328_v12  ;;  %v346_v10 = vadd.f32 %v1905_v43, %v340_v42  ;;  %v383_v37 = vmul.f32 %v378_v61, %v373_v47  ;;  %v384_v56 = vmul.f32 %v382_v16, %v373_v47 }
  0xfb   :  { %v361_v32 = vadd.f32 %v359_v20, %v333_v19  ;;  %v369_v30 = vadd.f32 %v367_v28, %v345_v27  ;;  %v469_v40 = vpop.permute.xlu1 %468  ;;  %v454_v5 = vrot.slane %v1935_v15, %v1801_v60  ;;  %v430_v48 = vrot.slane %v1935_v15, %v1789_v53 }
  0xfc   :  { %v362_v51 = vadd.f32 %v360_v31, %v334_v29  ;;  %v370_v46 = vadd.f32 %v368_v11, %v346_v10  ;;  %1430 = vset.pattern.permute.xlu1 %v1601_v25  ;;  %v402_v13 = vrot.slane %v1931_v45, %v1783_v50  ;;  %v463_v54 = vmul.f32 %v461_v34, %v450_v52 }
  0xfd   :  { %v385_v43 = vadd.f32 %v383_v37, %v361_v32  ;;  %901 = vperm.xlu1 %1430, %v1698_v7   ;;  %v464_v59 = vmul.f32 %v461_v34, %v454_v5  ;;  %v406_v3 = vrot.slane %v1935_v15, %v1783_v50  ;;  %v431_v23 = vmul.f32 %v426_v22, %v421_v58  ;;  %v493_v37 = vpop.permute.xlu0 %492 }
  0xfe   :  { %v386_v47 = vadd.f32 %v384_v56, %v362_v51  ;;  %v407_v4 = vmul.f32 %v402_v13, %v1917_v57  ;;  %v393_v25 = vadd.f32 %v391_v2, %v369_v30  ;;  %v394_v61 = vadd.f32 %v392_v18, %v370_v46 }
  0xff   :  { %v408_v6 = vmul.f32 %v406_v3, %v1917_v57  ;;  %v415_v17 = vmul.f32 %v1921_v38, %v402_v13  ;;  %v416_v62 = vmul.f32 %v1921_v38, %v406_v3  ;;  %v432_v63 = vmul.f32 %v430_v48, %v421_v58 }
 0x100   :  { %v485_v16 = vpop.permute.xlu1 %484  ;;  %v502_v1 = vrot.slane %v1935_v15, %v1832_v33  ;;  %v409_v9 = vadd.f32 %v407_v4, %v385_v43  ;;  %v439_v12 = vmul.f32 %v1927_v55, %v426_v22  ;;  %v1621_v42 = vmov 45  }
 0x101   :  { %1432 = vset.pattern.permute.xlu1 %v1621_v42  ;;  %v410_v19 = vadd.f32 %v408_v6, %v386_v47  ;;  %v417_v20 = vadd.f32 %v415_v17, %v393_v25  ;;  %v418_v2 = vadd.f32 %v416_v62, %v394_v61  ;;  %v440_v57 = vmul.f32 %v1927_v55, %v430_v48 }
 0x102   :  { %787 = vperm.xlu1 %1432, %v1698_v7   ;;  %v433_v18 = vadd.f32 %v431_v23, %v409_v9  ;;  %v455_v38 = vmul.f32 %v450_v52, %v1949_v8  ;;  %v474_v58 = vrot.slane %v1931_v45, %v1820_v14  ;;  %v478_v27 = vrot.slane %v1935_v15, %v1820_v14 }
 0x103   :  { %v441_v28 = vadd.f32 %v439_v12, %v417_v20  ;;  %v442_v22 = vadd.f32 %v440_v57, %v418_v2  ;;  %v434_v29 = vadd.f32 %v432_v63, %v410_v19  ;;  %v456_v31 = vmul.f32 %v454_v5, %v1949_v8  ;;  %v2037_v20 = vpop.permute.xlu0 %547 }
 0x104   :  { %v498_v10 = vrot.slane %v1931_v45, %v1832_v33  ;;  %v457_v55 = vadd.f32 %v455_v38, %v433_v18  ;;  %v480_v11 = vmul.f32 %v478_v27, %v469_v40  ;;  %v487_v32 = vmul.f32 %v485_v16, %v474_v58 }
 0x105   :  { %v509_v30 = vpop.permute.xlu1 %508  ;;  %v458_v56 = vadd.f32 %v456_v31, %v434_v29  ;;  %v465_v51 = vadd.f32 %v463_v54, %v441_v28  ;;  %v466_v46 = vadd.f32 %v464_v59, %v442_v22  ;;  %v488_v52 = vmul.f32 %v485_v16, %v478_v27 }
 0x106   :  { %v1622_v48 = vmov 39   ;;  %v504_v15 = vmul.f32 %v502_v1, %v493_v37  ;;  %v511_v43 = vmul.f32 %v509_v30, %v498_v10  ;;  %v512_v34 = vmul.f32 %v509_v30, %v502_v1 }
 0x107   :  { %1433 = vset.pattern.permute.xlu1 %v1622_v48  ;;  %v479_v8 = vmul.f32 %v474_v58, %v469_v40  ;;  %v482_v5 = vadd.f32 %v480_v11, %v458_v56  ;;  %v489_v13 = vadd.f32 %v487_v32, %v465_v51  ;;  %v490_v45 = vadd.f32 %v488_v52, %v466_v46  ;;  %v2042_v18 = vpop.permute.xlu0 %565 }
 0x108   :  { %852 = vperm.xlu1 %1433, %v1698_v7   ;;  %v503_v59 = vmul.f32 %v498_v10, %v493_v37  ;;  %v1625_v6 = vmov 46   ;;  %v1627_v61 = vmov 34   ;;  %v1631_v63 = vmov 41  }
 0x109   :  { %v481_v47 = vadd.f32 %v479_v8, %v457_v55  ;;  %v1990_v3 = vadd.f32 %v504_v15, %v482_v5  ;;  %v1992_v23 = vadd.f32 %v511_v43, %v489_v13  ;;  %v1994_v4 = vadd.f32 %v512_v34, %v490_v45 }
 0x10a   :  { %v1996_v54 = vpop.permute.xlu1 %541  ;;  %v2515_v9 = vmov 26   ;;  %v1633_v19 = vmov 47   ;;  %v1634_v57 = vmov 48   ;;  %v2514_v28 = vmov 27  }
 0x10b   :  { %2546 = vst [vmem:[#allocation21_spill] sm:$0xff] %v1992_v23  ;;  %2547 = vst [vmem:[#allocation22_spill] sm:$0xff] %v1994_v4  ;;  %523 = vrot.lane.b32.xlu0 %v1990_v3, %s1623_s2  ;;  %v2001_v40 = vadd.f32 %v503_v59, %v481_v47  ;;  %v2049_v58 = vpop.permute.xlu0 %600  ;;  %v1637_v31 = vmov 53   ;;  %v1638_v11 = vmov 54  }
 0x10c   :  { %1435 = vset.pattern.permute.xlu1 %v1602_v26 }
 0x10d   :  { %974 = vperm.xlu1 %1435, %v1698_v7  }
 0x10f   :  { %v2003_v25 = vpop.permute.xlu1 %553  ;;  %582 = vrot.lane.b32.xlu0 %v2001_v40, %s1624_s3  ;;  %v2055_v22 = vpop.permute.xlu0 %624 }
 0x111   :  { %1436 = vset.pattern.permute.xlu1 %v1625_v6 }
 0x112   :  { %860 = vperm.xlu1 %1436, %v1698_v7  }
 0x113   :  { %796 = vrot.lane.b32.xlu0 %v1990_v3, %s1626_s9  ;;  %v2060_v55 = vpop.permute.xlu0 %648 }
 0x114   :  { %v2008_v26 = vpop.permute.xlu1 %559 }
 0x116   :  { %521 = vrot.lane.b32.xlu1 %v2001_v40, %s1623_s2 }
 0x117   :  { %1438 = vset.pattern.permute.xlu1 %v1627_v61  ;;  %869 = vrot.lane.b32.xlu0 %v1990_v3, %s1628_s10  ;;  %v2064_v30 = vpop.permute.xlu0 %673 }
 0x119   :  { %v2012_v17 = vpop.permute.xlu1 %571 }
 0x11a   :  { %584 = vrot.lane.b32.xlu1 %v1990_v3, %s1624_s3 }
 0x11b   :  { %940 = vrot.lane.b32.xlu0 %v2001_v40, %s1629_s11  ;;  %v2068_v56 = vpop.permute.xlu0 %697 }
 0x11e   :  { %655 = vrot.lane.b32.xlu1 %v2001_v40, %s1630_s12  ;;  %v2017_v62 = vpop.permute.xlu1 %577 }
 0x11f   :  { %925 = vperm.xlu0 %1437, %v1698_v7   ;;  %v2072_v46 = vpop.permute.xlu0 %721 }
 0x122   :  { %657 = vrot.lane.b32.xlu1 %v1990_v3, %s1630_s12 }
 0x123   :  { %v2021_v16 = vpop.permute.xlu1 %608  ;;  %1440 = vset.pattern.permute.xlu0 %v1631_v63  ;;  %v2096_v63 = vld [vmem:[#allocation5] sm:$0x7f] }
 0x124   :  { %998 = vperm.xlu0 %1440, %v1698_v7   ;;  %v533_v23 = vrot.slane %v2096_v63, %v1762_v39  ;;  %v592_v33 = vrot.slane %v2096_v63, %v1765_v41 }
 0x126   :  { %794 = vrot.lane.b32.xlu1 %v2001_v40, %s1626_s9 }
 0x128   :  { %v2025_v1 = vpop.permute.xlu1 %616  ;;  %1443 = vset.pattern.permute.xlu0 %v2515_v9 }
 0x129   :  { %909 = vperm.xlu0 %1443, %v1698_v7  }
 0x12a   :  { %867 = vrot.lane.b32.xlu1 %v2001_v40, %s1628_s10 }
 0x12d   :  { %v2030_v12 = vpop.permute.xlu1 %632  ;;  %1446 = vset.pattern.permute.xlu0 %v1618_v21  ;;  %v2516_v21 = vmov 25  }
 0x12e   :  { %990 = vperm.xlu1 %1438, %v1698_v7  }
 0x132   :  { %942 = vrot.lane.b32.xlu1 %v1990_v3, %s1629_s11  ;;  %v2035_v42 = vpop.permute.xlu1 %640 }
 0x133   :  { %1439 = vset.pattern.permute.xlu1 %v1633_v19  ;;  %v2098_v19 = vld [vmem:[#allocation5 + $0x8] sm:$0x7f] }
 0x136   :  { %933 = vperm.xlu1 %1439, %v1698_v7  }
 0x137   :  { %v2040_v2 = vpop.permute.xlu1 %681 }
 0x13a   :  { %1441 = vset.pattern.permute.xlu1 %v1634_v57 }
 0x13b   :  { %1006 = vperm.xlu1 %1441, %v1698_v7  }
 0x13c   :  { %v2045_v38 = vpop.permute.xlu1 %689 }
 0x13f   :  { %1442 = vset.pattern.permute.xlu1 %v2516_v21 }
 0x140   :  { %836 = vperm.xlu1 %1442, %v1698_v7  }
 0x141   :  { %v2051_v27 = vpop.permute.xlu1 %705 }
 0x142   :  { %2548 = vst [vmem:[#allocation23_spill] sm:$0xff] %v2051_v27 }
 0x144   :  { %1444 = vset.pattern.permute.xlu1 %v2514_v28 }
 0x145   :  { %982 = vperm.xlu1 %1444, %v1698_v7  }
 0x146   :  { %v2057_v29 = vpop.permute.xlu1 %713 }
 0x147   :  { %2549 = vst [vmem:[#allocation24_spill] sm:$0xff] %v2057_v29 }
 0x149   :  { %1445 = vset.pattern.permute.xlu1 %v1637_v31  ;;  %v731_v31 = vrot.slane %v2096_v63, %v1783_v50 }
 0x14a   :  { %1014 = vperm.xlu1 %1445, %v1698_v7   ;;  %v756_v7 = vpop.permute.xlu0 %755 }
 0x14b   :  { %v740_v10 = vpop.permute.xlu1 %739  ;;  %v736_v24 = vmul.f32 %v731_v31, %v2001_v40  ;;  %v537_v40 = vrot.slane %v2098_v19, %v1762_v39  ;;  %v669_v39 = vrot.slane %v2098_v19, %v1771_v44 }
 0x14d   :  { %v2114_v21 = vmul.f32 %v756_v7, %v736_v24 }
 0x14e   :  { %1447 = vset.pattern.permute.xlu1 %v1638_v11  ;;  %v780_v43 = vpop.permute.xlu0 %779  ;;  %v735_v11 = vrot.slane %v2098_v19, %v1783_v50 }
 0x14f   :  { %2559 = vst [vmem:[#allocation34_spill] sm:$0xff] %v2114_v21  ;;  %v2120_v50 = vmul.f32 %v780_v43, %v736_v24 }
 0x150   :  { %v2062_v32 = vpop.permute.xlu1 %747  ;;  %v737_v49 = vmul.f32 %v735_v11, %v1990_v3 }
 0x151   :  { %2561 = vst [vmem:[#allocation36_spill] sm:$0xff] %v2120_v50 }
 0x152   :  { %v2080_v34 = vpop.permute.xlu0 %885  ;;  %v2116_v4 = vmul.f32 %v756_v7, %v737_v49  ;;  %v2122_v36 = vmul.f32 %v780_v43, %v737_v49  ;;  %v596_v7 = vrot.slane %v2098_v19, %v1765_v41  ;;  %v665_v43 = vrot.slane %v2096_v63, %v1771_v44 }
 0x154   :  { %2560 = vst [vmem:[#allocation35_spill] sm:$0xff] %v2116_v4  ;;  %2562 = vst [vmem:[#allocation37_spill] sm:$0xff] %v2122_v36 }
 0x155   :  { %v2066_v37 = vpop.permute.xlu1 %763 }
 0x156   :  { %v2086_v13 = vpop.permute.xlu0 %958 }
 0x157   :  { %2552 = vst [vmem:[#allocation27_spill] sm:$0xff] %v2086_v13 }
 0x15a   :  { %v2070_v51 = vpop.permute.xlu1 %771  ;;  %v2090_v47 = vpop.permute.xlu0 %966 }
 0x15b   :  { %2554 = vst [vmem:[#allocation29_spill] sm:$0xff] %v2090_v47  ;;  %v2180_v50 = vmul.f32 %v2070_v51, %v736_v24 }
 0x15d   :  { %2565 = vst [vmem:[#allocation40_spill] sm:$0xff] %v2180_v50 }
 0x15e   :  { %v2092_v6 = vpop.permute.xlu0 %917 }
 0x15f   :  { %v2074_v52 = vpop.permute.xlu1 %812  ;;  %2555 = vst [vmem:[#allocation30_spill] sm:$0xff] %v2092_v6 }
 0x164   :  { %v2076_v48 = vpop.permute.xlu1 %820 }
 0x169   :  { %v2078_v15 = vpop.permute.xlu1 %828 }
 0x16a   :  { %2550 = vst [vmem:[#allocation25_spill] sm:$0xff] %v2078_v15 }
 0x16e   :  { %v2082_v8 = vpop.permute.xlu1 %893 }
 0x173   :  { %v2084_v5 = vpop.permute.xlu1 %844 }
 0x174   :  { %2551 = vst [vmem:[#allocation26_spill] sm:$0xff] %v2084_v5 }
 0x178   :  { %v2088_v45 = vpop.permute.xlu1 %901 }
 0x179   :  { %2553 = vst [vmem:[#allocation28_spill] sm:$0xff] %v2088_v45 }
 0x17d   :  { %v788_v59 = vpop.permute.xlu1 %787  ;;  %v524_v57 = vpop.permute.xlu0 %523 }
 0x181   :  { %v583_v28 = vpop.permute.xlu0 %582 }
 0x183   :  { %v2094_v61 = vpop.permute.xlu1 %852 }
 0x184   :  { %2556 = vst [vmem:[#allocation31_spill] sm:$0xff] %v2094_v61  ;;  %v2148_v61 = vmul.f32 %v740_v10, %v736_v24 }
 0x188   :  { %v2104_v35 = vpop.permute.xlu1 %974 }
 0x189   :  { %2557 = vst [vmem:[#allocation32_spill] sm:$0xff] %v2104_v35 }
 0x18d   :  { %v2111_v9 = vpop.permute.xlu1 %860 }
 0x18e   :  { %2558 = vst [vmem:[#allocation33_spill] sm:$0xff] %v2111_v9  ;;  %v2131_v9 = vpop.permute.xlu0 %796 }
 0x191   :  { %v522_v3 = vpop.permute.xlu1 %521 }
 0x192   :  { %v528_v31 = vsel %vm527_vm0, %v522_v3, %v524_v57  ;;  %v529_v11 = vsel %vm527_vm0, %v524_v57, %v522_v3  ;;  %v2156_v57 = vmul.f32 %v740_v10, %v737_v49  ;;  %v2159_v3 = vmul.f32 %v2062_v32, %v736_v24  ;;  %v870_v5 = vpop.permute.xlu0 %869 }
 0x193   :  { %v2150_v29 = vmul.f32 %v533_v23, %v529_v11  ;;  %v2152_v44 = vmul.f32 %v537_v40, %v528_v31  ;;  %v2166_v23 = vmul.f32 %v2062_v32, %v737_v49  ;;  %v2169_v40 = vmul.f32 %v2066_v37, %v736_v24 }
 0x194   :  { %v2177_v10 = vmul.f32 %v2066_v37, %v737_v49  ;;  %v790_v32 = vmul.f32 %v788_v59, %v736_v24 }
 0x195   :  { %v585_v6 = vpop.permute.xlu1 %584  ;;  %2563 = vst [vmem:[#allocation38_spill] sm:$0xff] %v2169_v40  ;;  %v545_v37 = vmul.f32 %v1996_v54, %v2152_v44  ;;  %v551_v45 = vmul.f32 %v2037_v20, %v2152_v44  ;;  %v557_v4 = vmul.f32 %v2003_v25, %v2152_v44 }
 0x196   :  { %v587_v41 = vsel %vm586_vm1, %v583_v28, %v585_v6  ;;  %v588_v36 = vsel %vm586_vm1, %v585_v6, %v583_v28  ;;  %2564 = vst [vmem:[#allocation39_spill] sm:$0xff] %v2177_v10  ;;  %v2183_v28 = vmul.f32 %v2070_v51, %v737_v49  ;;  %v791_v6 = vmul.f32 %v788_v59, %v737_v49 }
 0x197   :  { %v2171_v31 = vmul.f32 %v592_v33, %v588_v36  ;;  %v2173_v11 = vmul.f32 %v596_v7, %v587_v41  ;;  %v580_v33 = vmul.f32 %v2017_v62, %v2150_v29  ;;  %v581_v41 = vmul.f32 %v2017_v62, %v2152_v44 }
 0x198   :  { %2566 = vst [vmem:[#allocation41_spill] sm:$0xff] %v2183_v28  ;;  %v562_v36 = vmul.f32 %v2008_v26, %v2150_v29  ;;  %v563_v51 = vmul.f32 %v2008_v26, %v2152_v44 }
 0x199   :  { %v656_v21 = vpop.permute.xlu1 %655  ;;  %v627_v24 = vmul.f32 %v2055_v22, %v2171_v31  ;;  %v628_v49 = vmul.f32 %v2055_v22, %v2173_v11  ;;  %v651_v62 = vmul.f32 %v2060_v55, %v2171_v31  ;;  %v652_v59 = vmul.f32 %v2060_v55, %v2173_v11 }
 0x19a   :  { %v604_v7 = vmul.f32 %v2049_v58, %v2173_v11  ;;  %v603_v26 = vmul.f32 %v2049_v58, %v2171_v31  ;;  %v612_v50 = vmul.f32 %v2021_v16, %v2173_v11  ;;  %v611_v22 = vmul.f32 %v2021_v16, %v2171_v31 }
 0x19b   :  { %v2212_v28 = vadd.f32 %v627_v24, %v562_v36  ;;  %v2214_v27 = vadd.f32 %v628_v49, %v563_v51  ;;  %v544_v55 = vmul.f32 %v1996_v54, %v2150_v29  ;;  %v550_v58 = vmul.f32 %v2037_v20, %v2150_v29  ;;  %v2232_v24 = vpop.permute.xlu0 %940 }
 0x19c   :  { %v556_v51 = vmul.f32 %v2003_v25, %v2150_v29  ;;  %v569_v54 = vmul.f32 %v2042_v18, %v2152_v44  ;;  %v653_v47 = vadd.f32 %v651_v62, %v580_v33  ;;  %v654_v15 = vadd.f32 %v652_v59, %v581_v41 }
 0x19d   :  { %2567 = vst [vmem:[#allocation42_spill] sm:$0xff] %v2214_v27  ;;  %v658_v35 = vpop.permute.xlu1 %657  ;;  %v606_v13 = vadd.f32 %v604_v7, %v545_v37  ;;  %v605_v10 = vadd.f32 %v603_v26, %v544_v55  ;;  %v614_v40 = vadd.f32 %v612_v50, %v551_v45  ;;  %v613_v14 = vadd.f32 %v611_v22, %v550_v58 }
 0x19e   :  { %v660_v16 = vsel %vm659_vm2, %v656_v21, %v658_v35  ;;  %v661_v36 = vsel %vm659_vm2, %v658_v35, %v656_v21  ;;  %v2568_v41 = vrot.slane %v2098_v19, %v1789_v53 }
 0x19f   :  { %v2234_v49 = vmul.f32 %v665_v43, %v661_v36  ;;  %v2236_v20 = vmul.f32 %v669_v39, %v660_v16  ;;  %v2256_v33 = vpop.permute.xlu0 %925 }
 0x1a1   :  { %v795_v27 = vpop.permute.xlu1 %794  ;;  %v724_v35 = vmul.f32 %v2072_v46, %v2234_v49  ;;  %v725_v25 = vmul.f32 %v2072_v46, %v2236_v20  ;;  %v677_v21 = vmul.f32 %v2064_v30, %v2236_v20  ;;  %v676_v39 = vmul.f32 %v2064_v30, %v2234_v49 }
 0x1a2   :  { %v799_v43 = vsel %vm798_vm3, %v795_v27, %v2131_v9  ;;  %v800_v50 = vsel %vm798_vm3, %v2131_v9, %v795_v27  ;;  %v685_v45 = vmul.f32 %v2040_v2, %v2236_v20  ;;  %v684_v46 = vmul.f32 %v2040_v2, %v2234_v49 }
 0x1a3   :  { %v2261_v30 = vmul.f32 %v2568_v41, %v800_v50  ;;  %v726_v37 = vadd.f32 %v724_v35, %v653_v47  ;;  %v727_v62 = vadd.f32 %v725_v25, %v654_v15  ;;  %v620_v9 = vmul.f32 %v2025_v1, %v2173_v11 }
 0x1a4   :  { %v2569_v27 = vrot.slane %v2096_v63, %v1789_v53  ;;  %v679_v2 = vadd.f32 %v677_v21, %v606_v13  ;;  %v678_v7 = vadd.f32 %v676_v39, %v605_v10  ;;  %v687_v26 = vadd.f32 %v685_v45, %v614_v40  ;;  %v2299_v21 = vpop.permute.xlu0 %998 }
 0x1a5   :  { %v868_v22 = vpop.permute.xlu1 %867  ;;  %v2271_v55 = vadd.f32 %v791_v6, %v727_v62  ;;  %v2273_v58 = vadd.f32 %v790_v32, %v726_v37  ;;  %v686_v16 = vadd.f32 %v684_v46, %v613_v14  ;;  %v619_v15 = vmul.f32 %v2025_v1, %v2171_v31 }
 0x1a6   :  { %v2269_v59 = vmul.f32 %v2569_v27, %v799_v43  ;;  %v872_v47 = vsel %vm871_vm4, %v868_v22, %v870_v5  ;;  %v873_v36 = vsel %vm871_vm4, %v870_v5, %v868_v22  ;;  %v745_v35 = vadd.f32 %v2156_v57, %v679_v2  ;;  %v2572_v22 = vld [vmem:[#allocation42_spill] sm:$0xff] }
 0x1a7   :  { %v816_v13 = vmul.f32 %v2074_v52, %v2261_v30  ;;  %v2570_v40 = vrot.slane %v2098_v19, %v1801_v60  ;;  %v636_v14 = vmul.f32 %v2030_v12, %v2173_v11  ;;  %v568_v1 = vmul.f32 %v2042_v18, %v2150_v29 }
 0x1a8   :  { %v635_v32 = vmul.f32 %v2030_v12, %v2171_v31  ;;  %v744_v57 = vadd.f32 %v2148_v61, %v678_v7  ;;  %v815_v6 = vmul.f32 %v2074_v52, %v2269_v59  ;;  %v753_v25 = vadd.f32 %v2166_v23, %v687_v26 }
 0x1a9   :  { %v2287_v10 = vmul.f32 %v2570_v40, %v873_v36  ;;  %v818_v5 = vadd.f32 %v816_v13, %v745_v35  ;;  %v2571_v39 = vrot.slane %v2096_v63, %v1801_v60  ;;  %v2306_v50 = vpop.permute.xlu1 %990  ;;  %v622_v18 = vadd.f32 %v620_v9, %v557_v4  ;;  %v2576_v40 = vld [vmem:[#allocation38_spill] sm:$0xff] }
 0x1aa   :  { %v575_v12 = vmul.f32 %v2012_v17, %v2152_v44  ;;  %v644_v61 = vmul.f32 %v2035_v42, %v2173_v11  ;;  %v817_v45 = vadd.f32 %v815_v6, %v744_v57  ;;  %v824_v52 = vmul.f32 %v2076_v48, %v2261_v30 }
 0x1ab   :  { %v2304_v43 = vmul.f32 %v2571_v39, %v872_v47  ;;  %v752_v23 = vadd.f32 %v2159_v3, %v686_v16  ;;  %v621_v46 = vadd.f32 %v619_v15, %v556_v51  ;;  %v889_v41 = vmul.f32 %v2080_v34, %v2287_v10  ;;  %v910_v15 = vpop.permute.xlu0 %909 }
 0x1ac   :  { %v823_v37 = vmul.f32 %v2076_v48, %v2269_v59  ;;  %v700_v4 = vmul.f32 %v2068_v56, %v2234_v49  ;;  %v638_v44 = vadd.f32 %v636_v14, %v569_v54  ;;  %v826_v62 = vadd.f32 %v824_v52, %v753_v25 }
 0x1ad   :  { %v701_v11 = vmul.f32 %v2068_v56, %v2236_v20  ;;  %v693_v9 = vmul.f32 %v2045_v38, %v2236_v20  ;;  %v637_v27 = vadd.f32 %v635_v32, %v568_v1  ;;  %v943_v3 = vpop.permute.xlu1 %942  ;;  %v888_v51 = vmul.f32 %v2080_v34, %v2304_v43  ;;  %v2573_v34 = vld [vmem:[#allocation19_spill] sm:$0xff] }
 0x1ae   :  { %v825_v2 = vadd.f32 %v823_v37, %v752_v23  ;;  %v702_v7 = vadd.f32 %v700_v4, %v2212_v28  ;;  %v2328_v48 = vadd.f32 %v644_v61, %v575_v12  ;;  %v945_v54 = vsel %vm944_vm5, %v2232_v24, %v943_v3  ;;  %v2577_v1 = vld [vmem:[#allocation39_spill] sm:$0xff]  ;;  %v2579_v12 = vld [vmem:[#allocation25_spill] sm:$0xff] }
 0x1af   :  { %v946_v56 = vsel %vm944_vm5, %v943_v3, %v2232_v24  ;;  %v897_v26 = vmul.f32 %v2082_v8, %v2287_v10  ;;  %v703_v16 = vadd.f32 %v701_v11, %v2572_v22  ;;  %v2574_v47 = vrot.slane %v2096_v63, %v2573_v34  ;;  %v2581_v23 = vld [vmem:[#allocation35_spill] sm:$0xff]  ;;  %v2582_v11 = vld [vmem:[#allocation28_spill] sm:$0xff] }
 0x1b0   :  { %v2575_v36 = vrot.slane %v2098_v19, %v2573_v34  ;;  %v891_v13 = vadd.f32 %v889_v41, %v818_v5  ;;  %v2350_v14 = vadd.f32 %v2576_v40, %v702_v7  ;;  %v896_v24 = vmul.f32 %v2082_v8, %v2304_v43  ;;  %v2578_v19 = vld [vmem:[#allocation27_spill] sm:$0xff] }
 0x1b1   :  { %v2342_v28 = vmul.f32 %v2574_v47, %v945_v54  ;;  %v2355_v32 = vadd.f32 %v2577_v1, %v703_v16  ;;  %v695_v57 = vadd.f32 %v693_v9, %v622_v18  ;;  %v692_v63 = vmul.f32 %v2045_v38, %v2234_v49  ;;  %v2359_v6 = vpop.permute.xlu1 %933  ;;  %v2580_v18 = vld [vmem:[#allocation29_spill] sm:$0xff]  ;;  %v2584_v22 = vld [vmem:[#allocation23_spill] sm:$0xff]  ;;  %v2586_v1 = vld [vmem:[#allocation26_spill] sm:$0xff] }
 0x1b2   :  { %v2347_v35 = vmul.f32 %v2575_v36, %v946_v56  ;;  %v890_v39 = vadd.f32 %v888_v51, %v817_v45  ;;  %v832_v61 = vmul.f32 %v2579_v12, %v2261_v30  ;;  %v2368_v8 = vmul.f32 %v910_v15, %v2304_v43 }
 0x1b3   :  { %v961_v5 = vmul.f32 %v2578_v19, %v2342_v28  ;;  %v761_v38 = vadd.f32 %v2581_v23, %v695_v57  ;;  %v574_v41 = vmul.f32 %v2012_v17, %v2150_v29  ;;  %v969_v45 = vmul.f32 %v2580_v18, %v2342_v28  ;;  %v2583_v17 = vld [vmem:[#allocation32_spill] sm:$0xff] }
 0x1b4   :  { %v962_v25 = vmul.f32 %v2578_v19, %v2347_v35  ;;  %v970_v52 = vmul.f32 %v2580_v18, %v2347_v35  ;;  %v905_v9 = vmul.f32 %v2582_v11, %v2287_v10  ;;  %v899_v3 = vadd.f32 %v897_v26, %v826_v62 }
 0x1b5   :  { %v963_v4 = vadd.f32 %v961_v5, %v890_v39  ;;  %v898_v51 = vadd.f32 %v896_v24, %v825_v2  ;;  %v694_v7 = vadd.f32 %v692_v63, %v621_v46  ;;  %v831_v54 = vmul.f32 %v2579_v12, %v2269_v59  ;;  %v2585_v2 = vld [vmem:[#allocation34_spill] sm:$0xff]  ;;  %v2588_v12 = vld [vmem:[#allocation41_spill] sm:$0xff] }
 0x1b6   :  { %v964_v37 = vadd.f32 %v962_v25, %v891_v13  ;;  %v834_v56 = vadd.f32 %v832_v61, %v761_v38  ;;  %v978_v29 = vmul.f32 %v2583_v17, %v2347_v35  ;;  %v709_v16 = vmul.f32 %v2584_v22, %v2236_v20  ;;  %v2386_v36 = vpop.permute.xlu1 %1006 }
 0x1b7   :  { %1019 = vrot.lane.b32.xlu0 %v963_v4, %s1639_s13  ;;  %v913_v47 = vmul.f32 %v910_v15, %v2287_v10  ;;  %v972_v62 = vadd.f32 %v970_v52, %v899_v3  ;;  %v760_v46 = vadd.f32 %v2585_v2, %v694_v7  ;;  %v904_v26 = vmul.f32 %v2582_v11, %v2304_v43  ;;  %v2587_v15 = vld [vmem:[#allocation30_spill] sm:$0xff]  ;;  %v2589_v11 = vld [vmem:[#allocation24_spill] sm:$0xff]  ;;  %v2590_v3 = vld [vmem:[#allocation31_spill] sm:$0xff] }
 0x1b8   :  { %1021 = vrot.lane.b32.xlu1 %v964_v37, %s1639_s13  ;;  %v971_v13 = vadd.f32 %v969_v45, %v898_v51  ;;  %v907_v40 = vadd.f32 %v905_v9, %v834_v56  ;;  %v711_v24 = vadd.f32 %v709_v16, %v638_v44  ;;  %v848_v57 = vmul.f32 %v2586_v1, %v2261_v30  ;;  %v2591_v56 = vld [vmem:[#allocation40_spill] sm:$0xff] }
 0x1b9   :  { %v833_v63 = vadd.f32 %v831_v54, %v760_v46  ;;  %v977_v19 = vmul.f32 %v2583_v17, %v2342_v28  ;;  %v921_v25 = vmul.f32 %v2587_v15, %v2287_v10  ;;  %v708_v39 = vmul.f32 %v2584_v22, %v2234_v49 }
 0x1ba   :  { %v980_v5 = vadd.f32 %v978_v29, %v907_v40  ;;  %v777_v61 = vadd.f32 %v2588_v12, %v711_v24  ;;  %v994_v44 = vmul.f32 %v2306_v50, %v2347_v35  ;;  %v847_v23 = vmul.f32 %v2586_v1, %v2269_v59  ;;  %v2594_v12 = vld [vmem:[#allocation33_spill] sm:$0xff] }
 0x1bb   :  { %1038 = vrot.lane.b32.xlu0 %v971_v13, %s1640_s14  ;;  %v906_v18 = vadd.f32 %v904_v26, %v833_v63  ;;  %v710_v52 = vadd.f32 %v708_v39, %v637_v27  ;;  %v920_v38 = vmul.f32 %v2587_v15, %v2304_v43  ;;  %v837_v37 = vpop.permute.xlu1 %836  ;;  %v993_v45 = vmul.f32 %v2306_v50, %v2342_v28  ;;  %v2592_v13 = vld [vmem:[#allocation37_spill] sm:$0xff] }
 0x1bc   :  { %1040 = vrot.lane.b32.xlu1 %v972_v62, %s1640_s14  ;;  %v850_v4 = vadd.f32 %v848_v57, %v777_v61  ;;  %v717_v9 = vmul.f32 %v2589_v11, %v2236_v20  ;;  %v856_v51 = vmul.f32 %v2590_v3, %v2261_v30  ;;  %v839_v7 = vmul.f32 %v837_v37, %v2269_v59 }
 0x1bd   :  { %v840_v27 = vmul.f32 %v837_v37, %v2261_v30  ;;  %v979_v54 = vadd.f32 %v977_v19, %v906_v18  ;;  %v776_v17 = vadd.f32 %v2591_v56, %v710_v52  ;;  %v929_v50 = vmul.f32 %v2256_v33, %v2287_v10 }
 0x1be   :  { %v923_v29 = vadd.f32 %v921_v25, %v850_v4  ;;  %v719_v22 = vadd.f32 %v717_v9, %v2328_v48  ;;  %v643_v20 = vmul.f32 %v2035_v42, %v2171_v31  ;;  %v841_v16 = vadd.f32 %v839_v7, %v2350_v14 }
 0x1bf   :  { %v842_v62 = vadd.f32 %v840_v27, %v2355_v32  ;;  %1057 = vrot.lane.b32.xlu0 %v979_v54, %s1574_s19  ;;  %v849_v2 = vadd.f32 %v847_v23, %v776_v17  ;;  %v716_v46 = vmul.f32 %v2589_v11, %v2234_v49  ;;  %v1002_v48 = vmul.f32 %v2299_v21, %v2347_v35 }
 0x1c0   :  { %1059 = vrot.lane.b32.xlu1 %v980_v5, %s1574_s19  ;;  %v996_v26 = vadd.f32 %v994_v44, %v923_v29  ;;  %v785_v40 = vadd.f32 %v2592_v13, %v719_v22  ;;  %v645_v24 = vadd.f32 %v643_v20, %v574_v41  ;;  %v983_v1 = vpop.permute.xlu1 %982  ;;  %v914_v31 = vadd.f32 %v2368_v8, %v841_v16  ;;  %v2593_v8 = vld [vmem:[#allocation36_spill] sm:$0xff]  ;;  %v517_v16 = vld [vmem:[#allocation5] sm:$0x80]  ;;  %s1283_s19 = sshll.u32 %s1645_s18, 4  ;;  %s1284_s19 = int_to_ptr.vmem [resolvable:$true] %s1283_s19 }
 0x1c1   :  { %v922_v57 = vadd.f32 %v920_v38, %v849_v2  ;;  %v915_v42 = vadd.f32 %v913_v47, %v842_v62  ;;  %v855_v14 = vmul.f32 %v2590_v3, %v2269_v59  ;;  %v985_v32 = vmul.f32 %v983_v1, %v2342_v28  ;;  %v518_v62 = vld [vmem:[#allocation5 + $0x8] sm:$0x80]  ;;  %v519_v2 = vld [vmem:[#allocation5 + $0x10] sm:$0x3f]  ;;  %s1544_s20 = scalar_lea.vmem %s1284_s19, 256  ;;  %p1549_p7 = scmp.lt.s32.totalorder %s1284_s19, %s1284_s19 }
 0x1c2   :  { %v986_v63 = vmul.f32 %v983_v1, %v2347_v35  ;;  %v858_v49 = vadd.f32 %v856_v51, %v785_v40  ;;  %v718_v19 = vadd.f32 %v716_v46, %v645_v24  ;;  %v928_v41 = vmul.f32 %v2256_v33, %v2304_v43  ;;  %v520_v46 = vld [vmem:[#allocation5 + $0x18] sm:$0x3f]  ;;  %p1545_p6 = scmp.ne.s32.totalorder %s1284_s19, %s1544_s20  ;;  %p1550_p8 = scmp.lt.s32.totalorder %s1544_s20, %s1544_s20 }
 0x1c3   :  { %v995_v15 = vadd.f32 %v993_v45, %v922_v57  ;;  %v2438_v47 = vadd.f32 %v985_v32, %v914_v31  ;;  %v864_v61 = vmul.f32 %v2594_v12, %v2261_v30  ;;  %v863_v44 = vmul.f32 %v2594_v12, %v2269_v59 }
 0x1c4   :  { %1078 = vrot.lane.b32.xlu1 %v996_v26, %s1641_s15  ;;  %v931_v25 = vadd.f32 %v929_v50, %v858_v49  ;;  %v2436_v39 = vadd.f32 %v986_v63, %v915_v42  ;;  %v784_v5 = vadd.f32 %v2593_v8, %v718_v19  ;;  %v1001_v23 = vmul.f32 %v2299_v21, %v2342_v28  ;;  %v2602_v26 = vld [vmem:[#allocation20_spill] sm:$0xff]  ;;  %v2603_v42 = vld [vmem:[#allocation15_spill] sm:$0xff]  ;;  %p1551_p9 = por %p1550_p8, %p1549_p7 }
 0x1c5   :  { %1076 = vrot.lane.b32.xlu0 %v995_v15, %s1641_s15  ;;  %v936_v33 = vmul.f32 %v2359_v6, %v2304_v43  ;;  %v937_v38 = vmul.f32 %v2359_v6, %v2287_v10  ;;  %v866_v30 = vadd.f32 %v864_v61, %v2271_v55  ;;  %v865_v4 = vadd.f32 %v863_v44, %v2273_v58  ;;  %v1460_v43 = vld [vmem:[#allocation8] sm:$0xff]  ;;  %v1461_v58 = vld [vmem:[#allocation7] sm:$0xff]  ;;  %v1015_v54 = vpop.permute.xlu1 %1014  ;;  %v2605_v44 = vld [vmem:[#allocation18_spill] sm:$0xff] }
 0x1c6   :  { %v1004_v18 = vadd.f32 %v1002_v48, %v931_v25  ;;  %v857_v52 = vadd.f32 %v855_v14, %v784_v5  ;;  %v1009_v59 = vmul.f32 %v2386_v36, %v2342_v28  ;;  %v1010_v45 = vmul.f32 %v2386_v36, %v2347_v35  ;;  %v2604_v49 = vld [vmem:[#allocation16_spill] sm:$0xff]  ;;  %p1552_p10 = pnand %p1551_p9, %p1545_p6 }
 0x1c7   :  { %v938_v11 = vadd.f32 %v936_v33, %v865_v4  ;;  %v939_v9 = vadd.f32 %v937_v38, %v866_v30  ;;  %v2595_v55 = vmov 25   ;;  %v2596_v28 = vmov 26  }
 0x1c8   :  { %1097 = vrot.lane.b32.xlu1 %v1004_v18, %s1642_s16  ;;  %v930_v37 = vadd.f32 %v928_v41, %v857_v52  ;;  %v2597_v3 = vmov 27   ;;  %v2598_v35 = vmov 29   ;;  %v2599_v36 = vmov 28  }
 0x1c9   :  { %v1011_v10 = vadd.f32 %v1009_v59, %v938_v11  ;;  %v1012_v6 = vadd.f32 %v1010_v45, %v939_v9  ;;  %v2600_v51 = vmov 30   ;;  %v1644_v7 = vmov 55  }
 0x1ca   :  { %v1003_v21 = vadd.f32 %v1001_v23, %v930_v37  ;;  %v2601_v27 = vmov 31   ;;  %v1029_v13 = vrot.slane %v517_v16, %v2602_v26  ;;  %v1033_v40 = vrot.slane %v518_v62, %v2602_v26 }
 0x1cb   :  { %v1048_v31 = vrot.slane %v519_v2, %v2603_v42  ;;  %v1052_v14 = vrot.slane %v520_v46, %v2603_v42  ;;  %v1067_v19 = vrot.slane %v519_v2, %v2604_v49  ;;  %v1071_v15 = vrot.slane %v520_v46, %v2604_v49 }
 0x1cc   :  { %1095 = vrot.lane.b32.xlu0 %v1003_v21, %s1642_s16  ;;  %1150 = vperm.xlu1 %1447, %v1460_v43   ;;  %v1017_v41 = vadd.f32 %v1015_v54, %v2438_v47  ;;  %v1018_v5 = vadd.f32 %v1015_v54, %v2436_v39  ;;  %v1086_v18 = vrot.slane %v519_v2, %v2605_v44 }
 0x1cd   :  { %v1090_v33 = vrot.slane %v520_v46, %v2605_v44  ;;  %v1105_v4 = vrot.slane %v519_v2, %v1789_v53  ;;  %v1109_v59 = vrot.slane %v520_v46, %v1789_v53 }
 0x1d0   :  { %1114 = vrot.lane.b32.xlu0 %v1011_v10, %s1643_s17  ;;  %1116 = vrot.lane.b32.xlu1 %v1012_v6, %s1643_s17 }
 0x1d1   :  { %1448 = vset.pattern.permute.xlu1 %v2595_v55 }
 0x1d4   :  { %1136 = vperm.xlu0 %1446, %v1461_v58   ;;  %1156 = vperm.xlu1 %1448, %v1461_v58  }
 0x1d8   :  { %1449 = vset.pattern.permute.xlu0 %v2596_v28  ;;  %1450 = vset.pattern.permute.xlu1 %v2597_v3  ;;  %v1124_v3 = vrot.slane %v519_v2, %v1801_v60 }
 0x1d9   :  { %1172 = vperm.xlu0 %1449, %v1461_v58   ;;  %1188 = vperm.xlu1 %1450, %v1461_v58  }
 0x1dd   :  { %1452 = vset.pattern.permute.xlu0 %v2598_v35  ;;  %1451 = vset.pattern.permute.xlu1 %v2599_v36  ;;  %v1128_v35 = vrot.slane %v520_v46, %v1801_v60 }
 0x1de   :  { %1220 = vperm.xlu0 %1452, %v1461_v58   ;;  %1204 = vperm.xlu1 %1451, %v1461_v58  }
 0x1e2   :  { %1453 = vset.pattern.permute.xlu1 %v2600_v51  ;;  %1455 = vset.pattern.permute.xlu0 %v1644_v7 }
 0x1e3   :  { %1236 = vperm.xlu1 %1453, %v1461_v58   ;;  %1268 = vperm.xlu0 %1455, %v1460_v43  }
 0x1e7   :  { %1454 = vset.pattern.permute.xlu1 %v2601_v27 }
 0x1e8   :  { %1252 = vperm.xlu1 %1454, %v1461_v58  }
 0x229   :  { %v1020_v17 = vpop.permute.xlu0 %1019 }
 0x22a   :  { %v1022_v56 = vpop.permute.xlu1 %1021 }
 0x22b   :  { %v1024_v1 = vsel %vm1023_vm6, %v1020_v17, %v1022_v56  ;;  %v1025_v57 = vsel %vm1023_vm6, %v1022_v56, %v1020_v17 }
 0x22c   :  { %v1034_v25 = vmul.f32 %v1029_v13, %v1025_v57  ;;  %v1035_v8 = vmul.f32 %v1033_v40, %v1024_v1  ;;  %v2607_v1 = vld [vmem:[#allocation22_spill] sm:$0xff] }
 0x22d   :  { %v1039_v22 = vpop.permute.xlu0 %1038 }
 0x22e   :  { %v1041_v29 = vpop.permute.xlu1 %1040  ;;  %v1036_v45 = vadd.f32 %v1034_v25, %v1017_v41  ;;  %v1037_v39 = vadd.f32 %v1035_v8, %v1018_v5  ;;  %v2608_v25 = vld [vmem:[#allocation17_spill] sm:$0xff] }
 0x22f   :  { %v1043_v32 = vsel %vm1042_vm7, %v1039_v22, %v1041_v29  ;;  %v1044_v63 = vsel %vm1042_vm7, %v1041_v29, %v1039_v22 }
 0x230   :  { %v1053_v52 = vmul.f32 %v1048_v31, %v1044_v63  ;;  %v1054_v23 = vmul.f32 %v1052_v14, %v1043_v32 }
 0x231   :  { %v1058_v20 = vpop.permute.xlu0 %1057 }
 0x232   :  { %v1060_v50 = vpop.permute.xlu1 %1059  ;;  %v1055_v10 = vadd.f32 %v1053_v52, %v1036_v45  ;;  %v1056_v6 = vadd.f32 %v1054_v23, %v1037_v39 }
 0x233   :  { %v1062_v12 = vsel %vm1061_vm8, %v1058_v20, %v1060_v50  ;;  %v1063_v61 = vsel %vm1061_vm8, %v1060_v50, %v1058_v20 }
 0x234   :  { %v1072_v21 = vmul.f32 %v1067_v19, %v1063_v61  ;;  %v1073_v11 = vmul.f32 %v1071_v15, %v1062_v12 }
 0x236   :  { %v1079_v48 = vpop.permute.xlu1 %1078  ;;  %v1074_v36 = vadd.f32 %v1072_v21, %v1055_v10  ;;  %v1075_v51 = vadd.f32 %v1073_v11, %v1056_v6 }
 0x237   :  { %v1077_v24 = vpop.permute.xlu0 %1076 }
 0x238   :  { %v1081_v30 = vsel %vm1080_vm9, %v1077_v24, %v1079_v48  ;;  %v1082_v47 = vsel %vm1080_vm9, %v1079_v48, %v1077_v24  ;;  %v2606_v24 = vld [vmem:[#allocation21_spill] sm:$0xff] }
 0x239   :  { %v1091_v55 = vmul.f32 %v1086_v18, %v1081_v30  ;;  %v1092_v58 = vmul.f32 %v1090_v33, %v1082_v47 }
 0x23a   :  { %v1098_v38 = vpop.permute.xlu1 %1097 }
 0x23b   :  { %v1093_v54 = vadd.f32 %v1091_v55, %v1074_v36  ;;  %v1094_v56 = vadd.f32 %v1092_v58, %v1075_v51 }
 0x23e   :  { %v1096_v37 = vpop.permute.xlu0 %1095 }
 0x23f   :  { %v1100_v9 = vsel %vm1099_vm10, %v1096_v37, %v1098_v38  ;;  %v1101_v43 = vsel %vm1099_vm10, %v1098_v38, %v1096_v37 }
 0x240   :  { %v1110_v7 = vmul.f32 %v1105_v4, %v1100_v9  ;;  %v1111_v27 = vmul.f32 %v1109_v59, %v1101_v43 }
 0x242   :  { %v1115_v17 = vpop.permute.xlu0 %1114  ;;  %v1112_v20 = vadd.f32 %v1110_v7, %v1093_v54  ;;  %v1113_v16 = vadd.f32 %v1111_v27, %v1094_v56 }
 0x247   :  { %v1151_v28 = vpop.permute.xlu1 %1150 }
 0x24b   :  { %v1117_v29 = vpop.permute.xlu1 %1116 }
 0x24c   :  { %v1119_v22 = vsel %vm1118_vm11, %v1115_v17, %v1117_v29  ;;  %v1120_v50 = vsel %vm1118_vm11, %v1117_v29, %v1115_v17 }
 0x24d   :  { %v1129_v62 = vmul.f32 %v1124_v3, %v1119_v22  ;;  %v1130_v13 = vmul.f32 %v1128_v35, %v1120_v50 }
 0x24f   :  { %v1131_v40 = vadd.f32 %v1129_v62, %v1112_v20  ;;  %v1132_v0 = vadd.f32 %v1130_v13, %v1113_v16  ;;  %v1157_v48 = vpop.permute.xlu1 %1156  ;;  %v1137_v2 = vpop.permute.xlu0 %1136 }
 0x251   :  { %v1133_v46 = vmul.f32 %v1131_v40, %v2606_v24  ;;  %v1134_v57 = vmul.f32 %v1132_v0, %v2607_v1  ;;  %v1463_v1 = vld [vmem:[#allocation2 + $0x8] sm:$0xff] }
 0x253   :  { %v1142_v31 = vrot.slane %v1133_v46, %v2603_v42  ;;  %v1146_v14 = vrot.slane %v1134_v57, %v2603_v42  ;;  %v1162_v32 = vrot.slane %v1133_v46, %v2604_v49  ;;  %v1166_v63 = vrot.slane %v1134_v57, %v2604_v49 }
 0x254   :  { %v1189_v19 = vpop.permute.xlu1 %1188  ;;  %v1178_v8 = vrot.slane %v1133_v46, %v2608_v25  ;;  %v1182_v5 = vrot.slane %v1134_v57, %v2608_v25  ;;  %v1173_v12 = vpop.permute.xlu0 %1172  ;;  %v1194_v61 = vrot.slane %v1133_v46, %v2605_v44  ;;  %v1198_v18 = vrot.slane %v1134_v57, %v2605_v44 }
 0x255   :  { %v1147_v15 = vmul.f32 %v1142_v31, %v1137_v2  ;;  %v1148_v41 = vmul.f32 %v1146_v14, %v1137_v2  ;;  %v1167_v33 = vmul.f32 %v1162_v32, %v1157_v48  ;;  %v1168_v42 = vmul.f32 %v1166_v63, %v1157_v48  ;;  %v1462_v2 = vld [vmem:[#allocation2] sm:$0xff] }
 0x256   :  { %v1183_v30 = vmul.f32 %v1178_v8, %v1173_v12  ;;  %v1184_v49 = vmul.f32 %v1182_v5, %v1173_v12  ;;  %v1199_v4 = vmul.f32 %v1194_v61, %v1189_v19  ;;  %v1200_v59 = vmul.f32 %v1198_v18, %v1189_v19 }
 0x257   :  { %v1153_v52 = vadd.f32 %v1151_v28, %v1147_v15  ;;  %v1154_v23 = vadd.f32 %v1151_v28, %v1148_v41  ;;  %v1226_v45 = vrot.slane %v1133_v46, %v1801_v60  ;;  %v1230_v39 = vrot.slane %v1134_v57, %v1801_v60 }
 0x258   :  { %v1210_v9 = vrot.slane %v1133_v46, %v1789_v53  ;;  %v1214_v44 = vrot.slane %v1134_v57, %v1789_v53  ;;  %v1242_v3 = vrot.slane %v1133_v46, %v2573_v34  ;;  %v1246_v35 = vrot.slane %v1134_v57, %v2573_v34 }
 0x259   :  { %v1169_v38 = vadd.f32 %v1167_v33, %v1153_v52  ;;  %v1170_v37 = vadd.f32 %v1168_v42, %v1154_v23  ;;  %v1205_v47 = vpop.permute.xlu1 %1204  ;;  %v1221_v43 = vpop.permute.xlu0 %1220  ;;  %v1258_v53 = vrot.slane %v1133_v46, %v2602_v26  ;;  %v1262_v29 = vrot.slane %v1134_v57, %v2602_v26 }
 0x25a   :  { %v1215_v55 = vmul.f32 %v1210_v9, %v1205_v47  ;;  %v1216_v58 = vmul.f32 %v1214_v44, %v1205_v47  ;;  %v1231_v36 = vmul.f32 %v1226_v45, %v1221_v43  ;;  %v1232_v51 = vmul.f32 %v1230_v39, %v1221_v43 }
 0x25b   :  { %v1185_v21 = vadd.f32 %v1183_v30, %v1169_v38  ;;  %v1186_v11 = vadd.f32 %v1184_v49, %v1170_v37 }
 0x25d   :  { %v1201_v10 = vadd.f32 %v1199_v4, %v1185_v21  ;;  %v1202_v6 = vadd.f32 %v1200_v59, %v1186_v11 }
 0x25e   :  { %v1237_v28 = vpop.permute.xlu1 %1236  ;;  %v1269_v13 = vpop.permute.xlu0 %1268 }
 0x25f   :  { %v1217_v7 = vadd.f32 %v1215_v55, %v1201_v10  ;;  %v1218_v60 = vadd.f32 %v1216_v58, %v1202_v6  ;;  %v1247_v56 = vmul.f32 %v1242_v3, %v1237_v28  ;;  %v1248_v17 = vmul.f32 %v1246_v35, %v1237_v28 }
 0x261   :  { %v1233_v27 = vadd.f32 %v1231_v36, %v1217_v7  ;;  %v1234_v54 = vadd.f32 %v1232_v51, %v1218_v60 }
 0x263   :  { %v1249_v22 = vadd.f32 %v1247_v56, %v1233_v27  ;;  %v1250_v50 = vadd.f32 %v1248_v17, %v1234_v54  ;;  %v1253_v20 = vpop.permute.xlu1 %1252 }
 0x264   :  { %v1263_v16 = vmul.f32 %v1258_v53, %v1253_v20  ;;  %v1264_v62 = vmul.f32 %v1262_v29, %v1253_v20 }
 0x266   :  { %v1265_v40 = vadd.f32 %v1263_v16, %v1249_v22  ;;  %v1266_v34 = vadd.f32 %v1264_v62, %v1250_v50 }
 0x268   :  { %v1271_v0 = vmul.f32 %v1269_v13, %v1265_v40  ;;  %v1272_v48 = vmul.f32 %v1269_v13, %v1266_v34 }
 0x26a   :  { %v1273_v24 = vadd.f32 %v1462_v2, %v1271_v0  ;;  %v1274_v31 = vadd.f32 %v1463_v1, %v1272_v48 }
 0x26c   :  { %1275 = vst [vmem:[#allocation10] sm:$0xff] %v1273_v24  ;;  %1276 = vst [vmem:[#allocation10 + $0x8] sm:$0xff] %v1274_v31 }
 0x26d   :  { %1555 = shalt.err (!%p1552_p10)
}
 0x26e   :  { %1286 = dma.vmem_to_hbm [thread:$0]  %s1284_s19, 256, %s2509_s4, [#allocation4]  }
 0x26f   :  { %1570 = dma.done.wait [#allocation4], 256  }
 0x270   :  { %1571 = vsyncadd [#allocation4], 4294967040 }
 0x271   :  { %1290 = vsyncpa [#allocation3], 1 }
 0x272   :  { %1291 = vsyncpa [#allocation6], 1 }
 0x273   :  { %1292 = vsyncpa [#allocation9], 1 }
 0x274   :  { %1293 = vsyncpa [#allocation4], 1 }

</bundles_post_ra>
